<compile_context>
chip_gen: v7x
topology: tpu7x:2x2x1
jax: 0.10.0
libtpu: 0.0.40
codegen_flags: <defaults>
</compile_context>

<pallas_src>
import functools

import jax
import jax.numpy as jnp
from jax.experimental import pallas as pl
from jax.experimental.pallas import tpu as pltpu


_VMEM = pl.BlockSpec(memory_space=pltpu.MemorySpace.VMEM)


# ---------------------------------------------------------------------------
# Fused Pallas kernel: all GraphConv layers + JK max-pool + final linear.
# ---------------------------------------------------------------------------
def _jknet_fused_kernel(adj_ref, x_ref, w_all_ref, b_all_ref,
                        w_last_ref, b_last_ref, out_ref, *, n_layers):
    adj = adj_ref[...]                       # [N, N]   resident for all layers
    x = x_ref[...]                           # [N, Fp]  lane-dense (Fp = 128)
    running_max = jnp.zeros_like(x)          # valid: layer outputs are >= 0

    for l in range(n_layers):                # static unroll (LLO sees it all)
        # neighbourhood 'sum' aggregation: A @ X on the MXU
        agg = jnp.dot(adj, x, preferred_element_type=jnp.float32)
        # merged matmul: [agg | x] @ [Wl ; Ws]  (+ folded bias)
        xa = jnp.concatenate([agg, x], axis=1)                 # [N, 2*Fp]
        h = jnp.dot(xa, w_all_ref[l], preferred_element_type=jnp.float32)
        h = h + b_all_ref[l]
        h = jnp.maximum(h, 0.0)                                # F.relu
        # TODO(synk): torch.nn.Dropout(0.5) is stochastic in train mode;
        # modelled as eval-mode identity here.
        x = h
        running_max = jnp.maximum(running_max, h)              # JK max-pool

    out_ref[...] = (jnp.dot(running_max, w_last_ref[...],
                            preferred_element_type=jnp.float32)
                    + b_last_ref[...])


# ---------------------------------------------------------------------------
# Parameter init (mirrors torch.nn.Linear defaults, deterministic)
# ---------------------------------------------------------------------------
def _init_linear(key, fan_in, fan_out):
    kw, kb = jax.random.split(key)
    bound = 1.0 / jnp.sqrt(jnp.float32(fan_in))
    w = jax.random.uniform(kw, (fan_in, fan_out), jnp.float32, -bound, bound)
    b = jax.random.uniform(kb, (1, fan_out), jnp.float32, -bound, bound)
    return w, b


def init_jknet_params(key, in_features, out_features, n_layers, n_units):
    layer_params = []
    dims = [in_features] + [n_units] * n_layers
    for i in range(n_layers):
        key, k1, k2 = jax.random.split(key, 3)
        wl, bl = _init_linear(k1, dims[i], n_units)          # self.linear
        ws, bs = _init_linear(k2, dims[i], n_units)          # self.self_loop_w
        extra_bias = jnp.zeros((1, n_units), jnp.float32)    # self.bias (zeros)
        layer_params.append((wl, bl, ws, bs, extra_bias))
    key, kf = jax.random.split(key)
    last_params = _init_linear(kf, n_units, out_features)    # last_linear
    return layer_params, last_params


# ---------------------------------------------------------------------------
# Host-side packing: pad features to 128 lanes, stack per-layer weights,
# merge [Wl ; Ws] and fold the three biases into one.
# ---------------------------------------------------------------------------
def pack_params(layer_params, last_params, n_units, out_features, f_pad=128):
    n_layers = len(layer_params)
    w_all = jnp.zeros((n_layers, 2 * f_pad, f_pad), jnp.float32)
    b_all = jnp.zeros((n_layers, 1, f_pad), jnp.float32)
    for l, (wl, bl, ws, bs, eb) in enumerate(layer_params):
        fin = wl.shape[0]
        w_all = w_all.at[l, :fin, :n_units].set(wl)                 # top: Wl
        w_all = w_all.at[l, f_pad:f_pad + fin, :n_units].set(ws)    # bot: Ws
        b_all = b_all.at[l, 0, :n_units].set((bl + bs + eb)[0])     # folded b
    w_last, b_last = last_params
    w_last_p = jnp.zeros((f_pad, f_pad), jnp.float32)
    w_last_p = w_last_p.at[:n_units, :out_features].set(w_last)
    b_last_p = jnp.zeros((1, f_pad), jnp.float32)
    b_last_p = b_last_p.at[0, :out_features].set(b_last[0])
    return w_all, b_all, w_last_p, b_last_p


# ---------------------------------------------------------------------------
# Forward: ONE pallas_call for the whole network.
# ---------------------------------------------------------------------------
def jknet_maxpool_forward(adj, x, w_all, b_all, w_last_p, b_last_p,
                          out_features):
    n = adj.shape[0]
    n_layers = w_all.shape[0]
    f_pad = w_all.shape[2]
    # zero-pad input features to the lane-dense width
    x_p = jnp.zeros((n, f_pad), jnp.float32).at[:, :x.shape[1]].set(x)

    kernel = functools.partial(_jknet_fused_kernel, n_layers=n_layers)
    out_p = pl.pallas_call(
        kernel,
        out_shape=jax.ShapeDtypeStruct((n, f_pad), jnp.float32),
        in_specs=[_VMEM] * 6,
        out_specs=_VMEM,
        compiler_params=pltpu.CompilerParams(vmem_limit_bytes=32 * 1024 * 1024),
    )(adj, x_p, w_all, b_all, w_last_p, b_last_p)
    return out_p[:, :out_features]


# ---------------------------------------------------------------------------
# Pure-JAX reference (unpadded, unfused) for a semantics self-check.
# ---------------------------------------------------------------------------
def _reference_forward(adj, x, layer_params, last_params):
    outs = []
    h = x
    for (wl, bl, ws, bs, eb) in layer_params:
        g = (adj @ h) @ wl + bl + h @ ws + bs + eb
        h = jnp.maximum(g, 0.0)
        outs.append(h)
    m = jnp.max(jnp.stack(outs, axis=0), axis=0)
    w_last, b_last = last_params
    return m @ w_last + b_last


# ---------------------------------------------------------------------------
if __name__ == "__main__":
    key = jax.random.PRNGKey(0)
    N = 32            # number of graph nodes
    in_features = 8
    out_features = 4
    n_layers = 6      # module defaults
    n_units = 16

    k_adj, k_x, k_p = jax.random.split(key, 3)

    # deterministic random graph; no self loops; ring edge (i+1) -> i keeps
    # every node with >= 1 incoming message.
    rand = jax.random.uniform(k_adj, (N, N))
    adj = (rand < 0.2).astype(jnp.float32)
    adj = adj * (1.0 - jnp.eye(N, dtype=jnp.float32))
    ring = jnp.roll(jnp.eye(N, dtype=jnp.float32), 1, axis=1)
    adj = jnp.maximum(adj, ring)

    x = jax.random.normal(k_x, (N, in_features), jnp.float32)

    layer_params, last_params = init_jknet_params(
        k_p, in_features, out_features, n_layers, n_units)
    w_all, b_all, w_last_p, b_last_p = pack_params(
        layer_params, last_params, n_units, out_features, f_pad=128)

    out = jknet_maxpool_forward(adj, x, w_all, b_all, w_last_p, b_last_p,
                                out_features)
    out = jax.block_until_ready(out)

    ref = _reference_forward(adj, x, layer_params, last_params)
    assert out.shape == (N, out_features)
    assert jnp.allclose(out, ref, atol=1e-4, rtol=1e-4)

    print("KERNEL_OK")
</pallas_src>

<mosaic_0001>
module attributes {stable_mosaic.version = 11 : i64} {
  func.func @_jknet_fused_kernel(%arg0: memref<32x32xf32, #tpu.memory_space<vmem>>, %arg1: memref<32x128xf32, #tpu.memory_space<vmem>>, %arg2: memref<6x256x128xf32, #tpu.memory_space<vmem>>, %arg3: memref<6x1x128xf32, #tpu.memory_space<vmem>>, %arg4: memref<128x128xf32, #tpu.memory_space<vmem>>, %arg5: memref<1x128xf32, #tpu.memory_space<vmem>>, %arg6: memref<32x128xf32, #tpu.memory_space<vmem>>) attributes {dimension_semantics = [], scalar_prefetch = 0 : i64, scratch_operands = 0 : i64, tpu.core_type = #tpu.core_type<tc>} {
    %c0 = arith.constant 0 : index
    %c0_0 = arith.constant 0 : index
    %0 = vector.load %arg0[%c0, %c0_0] : memref<32x32xf32, #tpu.memory_space<vmem>>, vector<32x32xf32>
    %c0_1 = arith.constant 0 : index
    %c0_2 = arith.constant 0 : index
    %1 = vector.load %arg1[%c0_1, %c0_2] : memref<32x128xf32, #tpu.memory_space<vmem>>, vector<32x128xf32>
    %cst = arith.constant 0.000000e+00 : f32
    %2 = vector.broadcast %cst : f32 to vector<32x128xf32>
    %cst_3 = arith.constant dense<0.000000e+00> : vector<32x128xf32>
    %3 = tpu.matmul %0, %1, %cst_3 {dimension_numbers = #tpu.dot_dimension_numbers<[1], [0], [0], [1], [0, 0, 1, 1], [], []>} : vector<32x32xf32>, vector<32x128xf32>, vector<32x128xf32> -> vector<32x128xf32>
    %4 = tpu.concatenate %3, %1 in 1 : vector<32x128xf32>, vector<32x128xf32> -> vector<32x256xf32>
    %c0_4 = arith.constant 0 : index
    %c0_5 = arith.constant 0 : index
    %c0_6 = arith.constant 0 : index
    %5 = vector.load %arg2[%c0_4, %c0_5, %c0_6] : memref<6x256x128xf32, #tpu.memory_space<vmem>>, vector<1x256x128xf32>
    %6 = vector.shape_cast %5 : vector<1x256x128xf32> to vector<256x128xf32>
    %cst_7 = arith.constant dense<0.000000e+00> : vector<32x128xf32>
    %7 = tpu.matmul %4, %6, %cst_7 {dimension_numbers = #tpu.dot_dimension_numbers<[1], [0], [0], [1], [0, 0, 1, 1], [], []>} : vector<32x256xf32>, vector<256x128xf32>, vector<32x128xf32> -> vector<32x128xf32>
    %c0_8 = arith.constant 0 : index
    %c0_9 = arith.constant 0 : index
    %c0_10 = arith.constant 0 : index
    %8 = vector.load %arg3[%c0_8, %c0_9, %c0_10] : memref<6x1x128xf32, #tpu.memory_space<vmem>>, vector<1x1x128xf32>
    %9 = vector.shape_cast %8 : vector<1x1x128xf32> to vector<1x128xf32>
    %10 = vector.broadcast %9 : vector<1x128xf32> to vector<32x128xf32>
    %11 = arith.addf %7, %10 : vector<32x128xf32>
    %cst_11 = arith.constant 0.000000e+00 : f32
    %12 = vector.broadcast %cst_11 : f32 to vector<32x128xf32>
    %13 = arith.maximumf %11, %12 : vector<32x128xf32>
    %14 = arith.maximumf %2, %13 : vector<32x128xf32>
    %cst_12 = arith.constant dense<0.000000e+00> : vector<32x128xf32>
    %15 = tpu.matmul %0, %13, %cst_12 {dimension_numbers = #tpu.dot_dimension_numbers<[1], [0], [0], [1], [0, 0, 1, 1], [], []>} : vector<32x32xf32>, vector<32x128xf32>, vector<32x128xf32> -> vector<32x128xf32>
    %16 = tpu.concatenate %15, %13 in 1 : vector<32x128xf32>, vector<32x128xf32> -> vector<32x256xf32>
    %c1 = arith.constant 1 : index
    %c0_13 = arith.constant 0 : index
    %c0_14 = arith.constant 0 : index
    %17 = vector.load %arg2[%c1, %c0_13, %c0_14] : memref<6x256x128xf32, #tpu.memory_space<vmem>>, vector<1x256x128xf32>
    %18 = vector.shape_cast %17 : vector<1x256x128xf32> to vector<256x128xf32>
    %cst_15 = arith.constant dense<0.000000e+00> : vector<32x128xf32>
    %19 = tpu.matmul %16, %18, %cst_15 {dimension_numbers = #tpu.dot_dimension_numbers<[1], [0], [0], [1], [0, 0, 1, 1], [], []>} : vector<32x256xf32>, vector<256x128xf32>, vector<32x128xf32> -> vector<32x128xf32>
    %c1_16 = arith.constant 1 : index
    %c0_17 = arith.constant 0 : index
    %c0_18 = arith.constant 0 : index
    %20 = vector.load %arg3[%c1_16, %c0_17, %c0_18] : memref<6x1x128xf32, #tpu.memory_space<vmem>>, vector<1x1x128xf32>
    %21 = vector.shape_cast %20 : vector<1x1x128xf32> to vector<1x128xf32>
    %22 = vector.broadcast %21 : vector<1x128xf32> to vector<32x128xf32>
    %23 = arith.addf %19, %22 : vector<32x128xf32>
    %cst_19 = arith.constant 0.000000e+00 : f32
    %24 = vector.broadcast %cst_19 : f32 to vector<32x128xf32>
    %25 = arith.maximumf %23, %24 : vector<32x128xf32>
    %26 = arith.maximumf %14, %25 : vector<32x128xf32>
    %cst_20 = arith.constant dense<0.000000e+00> : vector<32x128xf32>
    %27 = tpu.matmul %0, %25, %cst_20 {dimension_numbers = #tpu.dot_dimension_numbers<[1], [0], [0], [1], [0, 0, 1, 1], [], []>} : vector<32x32xf32>, vector<32x128xf32>, vector<32x128xf32> -> vector<32x128xf32>
    %28 = tpu.concatenate %27, %25 in 1 : vector<32x128xf32>, vector<32x128xf32> -> vector<32x256xf32>
    %c2 = arith.constant 2 : index
    %c0_21 = arith.constant 0 : index
    %c0_22 = arith.constant 0 : index
    %29 = vector.load %arg2[%c2, %c0_21, %c0_22] : memref<6x256x128xf32, #tpu.memory_space<vmem>>, vector<1x256x128xf32>
    %30 = vector.shape_cast %29 : vector<1x256x128xf32> to vector<256x128xf32>
    %cst_23 = arith.constant dense<0.000000e+00> : vector<32x128xf32>
    %31 = tpu.matmul %28, %30, %cst_23 {dimension_numbers = #tpu.dot_dimension_numbers<[1], [0], [0], [1], [0, 0, 1, 1], [], []>} : vector<32x256xf32>, vector<256x128xf32>, vector<32x128xf32> -> vector<32x128xf32>
    %c2_24 = arith.constant 2 : index
    %c0_25 = arith.constant 0 : index
    %c0_26 = arith.constant 0 : index
    %32 = vector.load %arg3[%c2_24, %c0_25, %c0_26] : memref<6x1x128xf32, #tpu.memory_space<vmem>>, vector<1x1x128xf32>
    %33 = vector.shape_cast %32 : vector<1x1x128xf32> to vector<1x128xf32>
    %34 = vector.broadcast %33 : vector<1x128xf32> to vector<32x128xf32>
    %35 = arith.addf %31, %34 : vector<32x128xf32>
    %cst_27 = arith.constant 0.000000e+00 : f32
    %36 = vector.broadcast %cst_27 : f32 to vector<32x128xf32>
    %37 = arith.maximumf %35, %36 : vector<32x128xf32>
    %38 = arith.maximumf %26, %37 : vector<32x128xf32>
    %cst_28 = arith.constant dense<0.000000e+00> : vector<32x128xf32>
    %39 = tpu.matmul %0, %37, %cst_28 {dimension_numbers = #tpu.dot_dimension_numbers<[1], [0], [0], [1], [0, 0, 1, 1], [], []>} : vector<32x32xf32>, vector<32x128xf32>, vector<32x128xf32> -> vector<32x128xf32>
    %40 = tpu.concatenate %39, %37 in 1 : vector<32x128xf32>, vector<32x128xf32> -> vector<32x256xf32>
    %c3 = arith.constant 3 : index
    %c0_29 = arith.constant 0 : index
    %c0_30 = arith.constant 0 : index
    %41 = vector.load %arg2[%c3, %c0_29, %c0_30] : memref<6x256x128xf32, #tpu.memory_space<vmem>>, vector<1x256x128xf32>
    %42 = vector.shape_cast %41 : vector<1x256x128xf32> to vector<256x128xf32>
    %cst_31 = arith.constant dense<0.000000e+00> : vector<32x128xf32>
    %43 = tpu.matmul %40, %42, %cst_31 {dimension_numbers = #tpu.dot_dimension_numbers<[1], [0], [0], [1], [0, 0, 1, 1], [], []>} : vector<32x256xf32>, vector<256x128xf32>, vector<32x128xf32> -> vector<32x128xf32>
    %c3_32 = arith.constant 3 : index
    %c0_33 = arith.constant 0 : index
    %c0_34 = arith.constant 0 : index
    %44 = vector.load %arg3[%c3_32, %c0_33, %c0_34] : memref<6x1x128xf32, #tpu.memory_space<vmem>>, vector<1x1x128xf32>
    %45 = vector.shape_cast %44 : vector<1x1x128xf32> to vector<1x128xf32>
    %46 = vector.broadcast %45 : vector<1x128xf32> to vector<32x128xf32>
    %47 = arith.addf %43, %46 : vector<32x128xf32>
    %cst_35 = arith.constant 0.000000e+00 : f32
    %48 = vector.broadcast %cst_35 : f32 to vector<32x128xf32>
    %49 = arith.maximumf %47, %48 : vector<32x128xf32>
    %50 = arith.maximumf %38, %49 : vector<32x128xf32>
    %cst_36 = arith.constant dense<0.000000e+00> : vector<32x128xf32>
    %51 = tpu.matmul %0, %49, %cst_36 {dimension_numbers = #tpu.dot_dimension_numbers<[1], [0], [0], [1], [0, 0, 1, 1], [], []>} : vector<32x32xf32>, vector<32x128xf32>, vector<32x128xf32> -> vector<32x128xf32>
    %52 = tpu.concatenate %51, %49 in 1 : vector<32x128xf32>, vector<32x128xf32> -> vector<32x256xf32>
    %c4 = arith.constant 4 : index
    %c0_37 = arith.constant 0 : index
    %c0_38 = arith.constant 0 : index
    %53 = vector.load %arg2[%c4, %c0_37, %c0_38] : memref<6x256x128xf32, #tpu.memory_space<vmem>>, vector<1x256x128xf32>
    %54 = vector.shape_cast %53 : vector<1x256x128xf32> to vector<256x128xf32>
    %cst_39 = arith.constant dense<0.000000e+00> : vector<32x128xf32>
    %55 = tpu.matmul %52, %54, %cst_39 {dimension_numbers = #tpu.dot_dimension_numbers<[1], [0], [0], [1], [0, 0, 1, 1], [], []>} : vector<32x256xf32>, vector<256x128xf32>, vector<32x128xf32> -> vector<32x128xf32>
    %c4_40 = arith.constant 4 : index
    %c0_41 = arith.constant 0 : index
    %c0_42 = arith.constant 0 : index
    %56 = vector.load %arg3[%c4_40, %c0_41, %c0_42] : memref<6x1x128xf32, #tpu.memory_space<vmem>>, vector<1x1x128xf32>
    %57 = vector.shape_cast %56 : vector<1x1x128xf32> to vector<1x128xf32>
    %58 = vector.broadcast %57 : vector<1x128xf32> to vector<32x128xf32>
    %59 = arith.addf %55, %58 : vector<32x128xf32>
    %cst_43 = arith.constant 0.000000e+00 : f32
    %60 = vector.broadcast %cst_43 : f32 to vector<32x128xf32>
    %61 = arith.maximumf %59, %60 : vector<32x128xf32>
    %62 = arith.maximumf %50, %61 : vector<32x128xf32>
    %cst_44 = arith.constant dense<0.000000e+00> : vector<32x128xf32>
    %63 = tpu.matmul %0, %61, %cst_44 {dimension_numbers = #tpu.dot_dimension_numbers<[1], [0], [0], [1], [0, 0, 1, 1], [], []>} : vector<32x32xf32>, vector<32x128xf32>, vector<32x128xf32> -> vector<32x128xf32>
    %64 = tpu.concatenate %63, %61 in 1 : vector<32x128xf32>, vector<32x128xf32> -> vector<32x256xf32>
    %c5 = arith.constant 5 : index
    %c0_45 = arith.constant 0 : index
    %c0_46 = arith.constant 0 : index
    %65 = vector.load %arg2[%c5, %c0_45, %c0_46] : memref<6x256x128xf32, #tpu.memory_space<vmem>>, vector<1x256x128xf32>
    %66 = vector.shape_cast %65 : vector<1x256x128xf32> to vector<256x128xf32>
    %cst_47 = arith.constant dense<0.000000e+00> : vector<32x128xf32>
    %67 = tpu.matmul %64, %66, %cst_47 {dimension_numbers = #tpu.dot_dimension_numbers<[1], [0], [0], [1], [0, 0, 1, 1], [], []>} : vector<32x256xf32>, vector<256x128xf32>, vector<32x128xf32> -> vector<32x128xf32>
    %c5_48 = arith.constant 5 : index
    %c0_49 = arith.constant 0 : index
    %c0_50 = arith.constant 0 : index
    %68 = vector.load %arg3[%c5_48, %c0_49, %c0_50] : memref<6x1x128xf32, #tpu.memory_space<vmem>>, vector<1x1x128xf32>
    %69 = vector.shape_cast %68 : vector<1x1x128xf32> to vector<1x128xf32>
    %70 = vector.broadcast %69 : vector<1x128xf32> to vector<32x128xf32>
    %71 = arith.addf %67, %70 : vector<32x128xf32>
    %cst_51 = arith.constant 0.000000e+00 : f32
    %72 = vector.broadcast %cst_51 : f32 to vector<32x128xf32>
    %73 = arith.maximumf %71, %72 : vector<32x128xf32>
    %74 = arith.maximumf %62, %73 : vector<32x128xf32>
    %c0_52 = arith.constant 0 : index
    %c0_53 = arith.constant 0 : index
    %75 = vector.load %arg4[%c0_52, %c0_53] : memref<128x128xf32, #tpu.memory_space<vmem>>, vector<128x128xf32>
    %cst_54 = arith.constant dense<0.000000e+00> : vector<32x128xf32>
    %76 = tpu.matmul %74, %75, %cst_54 {dimension_numbers = #tpu.dot_dimension_numbers<[1], [0], [0], [1], [0, 0, 1, 1], [], []>} : vector<32x128xf32>, vector<128x128xf32>, vector<32x128xf32> -> vector<32x128xf32>
    %c0_55 = arith.constant 0 : index
    %c0_56 = arith.constant 0 : index
    %77 = vector.load %arg5[%c0_55, %c0_56] : memref<1x128xf32, #tpu.memory_space<vmem>>, vector<1x128xf32>
    %78 = vector.broadcast %77 : vector<1x128xf32> to vector<32x128xf32>
    %79 = arith.addf %76, %78 : vector<32x128xf32>
    %c0_57 = arith.constant 0 : index
    %c0_58 = arith.constant 0 : index
    %80 = vector.load %arg6[%c0_57, %c0_58] : memref<32x128xf32, #tpu.memory_space<vmem>>, vector<32x128xf32>
    tpu.vector_store %arg6[%c0_57, %c0_58], %79 {strides = array<i32>} : memref<32x128xf32, #tpu.memory_space<vmem>>, vector<32x128xf32>,
    return
  }
}

</mosaic_0001>

<bundles_post_ra>
// kernel: tpu_custom_call.1
= control target key start
LH: loop header
LB: loop body
LE: loop exit
PB: predicated region body
PF: predicated region fallthrough
CT: control target
= control target key end

     0   :  { %11 = vsyncpa [#allocation3], 0  ;;  %s2752_s0 = inlined_call_operand.hbm [shape: f32[32,32], index: 0, kind: input, shape index: {}]   ;;  %s2753_s1 = inlined_call_operand.hbm [shape: f32[32,128], index: 1, kind: input, shape index: {}]   ;;  %s2754_s2 = inlined_call_operand.hbm [shape: f32[6,256,128], index: 2, kind: input, shape index: {}]   ;;  %s2755_s3 = inlined_call_operand.vmem [shape: f32[6,1,128], index: 3, kind: input, shape index: {}]   ;;  %s2756_s4 = inlined_call_operand.hbm [shape: f32[128,128], index: 4, kind: input, shape index: {}]   ;;  %s2757_s5 = inlined_call_operand.vmem [shape: f32[1,128], index: 5, kind: input, shape index: {}]   ;;  %s2758_s6 = inlined_call_operand.hbm [shape: f32[32,128], index: 6, kind: output, shape index: {}]  }
   0x1   :  { %12 = vsyncpa [#allocation6], 0 }
   0x2   :  { %13 = vsyncpa [#allocation9], 0 }
   0x3   :  { %14 = vsyncpa [#allocation4], 0  ;;  %s2433_s21 = smov [#allocation5]   ;;  %s2434_s23 = smov [#allocation2]  }
   0x4   :  { %s32_s22 = sshll.u32 %s2433_s21, 4  ;;  %s20_s24 = sshll.u32 %s2434_s23, 4  ;;  %s33_s22 = int_to_ptr.vmem [resolvable:$true] %s32_s22  ;;  %s2475_s24 = int_to_ptr.vmem [resolvable:$true] %s20_s24 }
   0x5   :  { %s2315_s27 = scalar_lea.hbm %s2753_s1, 512 }
   0x6   :  { %p2316_p0 = scmp.ne.s32.totalorder %s2753_s1, %s2315_s27  ;;  %p2319_p1 = scmp.lt.u32.totalorder %s2315_s27, %s2753_s1 }
   0x8   :  { %p2321_p2 = pnand %p2319_p1, %p2316_p0 }
   0xa   :  { %2324 = shalt.err (!%p2321_p2)
}
   0xb   :  { %s2325_s8 = scalar_lea.vmem %s33_s22, 512  ;;  %p2330_p4 = scmp.lt.s32.totalorder %s33_s22, %s33_s22 }
   0xc   :  { %p2326_p3 = scmp.ne.s32.totalorder %s33_s22, %s2325_s8  ;;  %p2331_p5 = scmp.lt.s32.totalorder %s2325_s8, %s2325_s8 }
   0xe   :  { %p2332_p6 = por %p2331_p5, %p2330_p4 }
  0x10   :  { %p2333_p7 = pnand %p2332_p6, %p2326_p3 }
  0x12   :  { %2336 = shalt.err (!%p2333_p7)
}
  0x13   :  { %s2435_s9 = smov 128   ;;  %s2436_s10 = smov 8  }
  0x14   :  { %38 = dma.hbm_to_vmem [thread:$0]  %s2753_s1, 512, %s33_s22, [#allocation6], %s2435_s9, %s2435_s9, %s2436_s10  }
  0x15   :  { %s2337_s15 = scalar_lea.hbm %s2752_s0, 512 }
  0x16   :  { %p2338_p8 = scmp.ne.s32.totalorder %s2752_s0, %s2337_s15  ;;  %p2341_p9 = scmp.lt.u32.totalorder %s2337_s15, %s2752_s0 }
  0x18   :  { %p2343_p10 = pnand %p2341_p9, %p2338_p8 }
  0x1a   :  { %2346 = shalt.err (!%p2343_p10)
}
  0x1b   :  { %s2347_s20 = scalar_lea.vmem %s2475_s24, 512  ;;  %p2352_p12 = scmp.lt.s32.totalorder %s2475_s24, %s2475_s24 }
  0x1c   :  { %p2348_p11 = scmp.ne.s32.totalorder %s2475_s24, %s2347_s20  ;;  %p2353_p13 = scmp.lt.s32.totalorder %s2347_s20, %s2347_s20 }
  0x1e   :  { %p2354_p0 = por %p2353_p13, %p2352_p12 }
  0x20   :  { %p2355_p1 = pnand %p2354_p0, %p2348_p11 }
  0x22   :  { %2358 = shalt.err (!%p2355_p1)
}
  0x23   :  { %26 = dma.hbm_to_vmem [thread:$0]  %s2752_s0, 512, %s2475_s24, [#allocation3], %s2435_s9, %s2435_s9, %s2436_s10  }
  0x24   :  { %s2437_s22 = smov [#allocation7]   ;;  %s2438_s25 = smov [#allocation8]  }
  0x25   :  { %s44_s23 = sshll.u32 %s2437_s22, 4  ;;  %s58_s26 = sshll.u32 %s2438_s25, 4  ;;  %s45_s23 = int_to_ptr.vmem [resolvable:$true] %s44_s23  ;;  %s2512_s26 = int_to_ptr.vmem [resolvable:$true] %s58_s26 }
  0x26   :  { %s2359_s29 = scalar_lea.hbm %s2754_s2, 24576 }
  0x27   :  { %p2360_p2 = scmp.ne.s32.totalorder %s2754_s2, %s2359_s29  ;;  %p2363_p3 = scmp.lt.u32.totalorder %s2359_s29, %s2754_s2 }
  0x29   :  { %p2365_p4 = pnand %p2363_p3, %p2360_p2 }
  0x2b   :  { %2368 = shalt.err (!%p2365_p4)
}
  0x2c   :  { %s2369_s0 = scalar_lea.vmem %s45_s23, 24576  ;;  %p2374_p6 = scmp.lt.s32.totalorder %s45_s23, %s45_s23 }
  0x2d   :  { %p2370_p5 = scmp.ne.s32.totalorder %s45_s23, %s2369_s0  ;;  %p2375_p7 = scmp.lt.s32.totalorder %s2369_s0, %s2369_s0 }
  0x2f   :  { %p2376_p8 = por %p2375_p7, %p2374_p6 }
  0x31   :  { %p2377_p9 = pnand %p2376_p8, %p2370_p5 }
  0x33   :  { %2380 = shalt.err (!%p2377_p9)
}
  0x34   :  { %50 = dma.hbm_to_vmem [thread:$0]  %s2754_s2, 24576, %s45_s23, [#allocation6], %s2435_s9, %s2435_s9, %s2436_s10  }
  0x35   :  { %s2381_s15 = scalar_lea.hbm %s2756_s4, 2048 }
  0x36   :  { %p2382_p10 = scmp.ne.s32.totalorder %s2756_s4, %s2381_s15  ;;  %p2385_p11 = scmp.lt.u32.totalorder %s2381_s15, %s2756_s4 }
  0x38   :  { %p2387_p12 = pnand %p2385_p11, %p2382_p10 }
  0x3a   :  { %2390 = shalt.err (!%p2387_p12)
}
  0x3b   :  { %s2391_s20 = scalar_lea.vmem %s2512_s26, 2048  ;;  %p2396_p0 = scmp.lt.s32.totalorder %s2512_s26, %s2512_s26 }
  0x3c   :  { %p2392_p13 = scmp.ne.s32.totalorder %s2512_s26, %s2391_s20  ;;  %p2397_p1 = scmp.lt.s32.totalorder %s2391_s20, %s2391_s20 }
  0x3e   :  { %p2398_p2 = por %p2397_p1, %p2396_p0 }
  0x40   :  { %p2399_p3 = pnand %p2398_p2, %p2392_p13 }
  0x42   :  { %2402 = shalt.err (!%p2399_p3)
}
  0x43   :  { %64 = dma.hbm_to_vmem [thread:$0]  %s2756_s4, 2048, %s2512_s26, [#allocation9], %s2435_s9, %s2435_s9, %s2436_s10  }
  0x44   :  { %2425 = dma.done.wait [#allocation3], 512  }
  0x45   :  { %2426 = vsyncadd [#allocation3], 4294966784 }
  0x46   :  { %2427 = dma.done.wait [#allocation6], 25088  }
  0x47   :  { %2428 = vsyncadd [#allocation6], 4294942208 }
  0x48   :  { %2429 = dma.done.wait [#allocation9], 2048  }
  0x49   :  { %2430 = vsyncadd [#allocation9], 4294965248  ;;  %vm87_vm0 = vcmask 261120   ;;  %v83_v0 = vld [vmem:[#allocation5] sm:$0xff]  ;;  %v2549_v1 = vld [vmem:[#allocation5 + $0x8] sm:$0xff]  ;;  %s2439_s0 = smov [#allocation10]  }
  0x4a   :  { %v2551_v2 = vld [vmem:[#allocation5 + $0x10] sm:$0xff]  ;;  %v2033_v3 = vpack.c.bf16 %v2549_v1, %v83_v0  ;;  %v2554_v4 = vld [vmem:[#allocation5 + $0x18] sm:$0xff]  ;;  %v2556_v5 = vld [vmem:[#allocation2] sm:$0xff]  ;;  %288 = vmatprep.mubr.f32.mxu1 %v83_v0  ;;  %s1529_s24 = sshll.u32 %s2439_s0, 4  ;;  %s1530_s24 = int_to_ptr.vmem [resolvable:$true] %s1529_s24 }
  0x4b   :  { %v2037_v6 = vpack.c.bf16 %v2554_v4, %v2551_v2  ;;  %1919 = vmatprep.mubr.msk.f32.mxu0 %vm87_vm0, %v2556_v5  ;;  %v201_v7 = vld [vmem:[#allocation7 + $0x80] sm:$0xff]  ;;  %v202_v8 = vld [vmem:[#allocation7 + $0x88] sm:$0xff]  ;;  %v203_v13 = vld [vmem:[#allocation7 + $0x90] sm:$0xff]  ;;  %s2403_s12 = scalar_lea.vmem %s1530_s24, 512  ;;  %p2408_p5 = scmp.lt.s32.totalorder %s1530_s24, %s1530_s24 }
  0x4c   :  { %2034 = vmatprep.subr.bf16.mxu0 %v2033_v3  ;;  %v185_v9 = vld [vmem:[#allocation7] sm:$0xff]  ;;  %v186_v10 = vld [vmem:[#allocation7 + $0x8] sm:$0xff]  ;;  %v2041_v11 = vpack.c.bf16 %v202_v8, %v201_v7  ;;  %v204_v14 = vld [vmem:[#allocation7 + $0x98] sm:$0xff]  ;;  %p2404_p4 = scmp.ne.s32.totalorder %s1530_s24, %s2403_s12  ;;  %p2409_p6 = scmp.lt.s32.totalorder %s2403_s12, %s2403_s12 }
  0x4d   :  { %2036 = vmatpush3.bf16.msra.mxu0 %v2033_v3  ;;  %v2043_v12 = vpack.c.bf16 %v186_v10, %v185_v9  ;;  %v187_v15 = vld [vmem:[#allocation7 + $0x10] sm:$0xff]  ;;  %v2045_v16 = vpack.c.bf16 %v204_v14, %v203_v13  ;;  %v188_v17 = vld [vmem:[#allocation7 + $0x18] sm:$0xff]  ;;  %v205_v18 = vld [vmem:[#allocation7 + $0xa0] sm:$0xff] }
  0x4e   :  { %2038 = vmatprep.subr.bf16.mxu0 %v2037_v6  ;;  %v206_v19 = vld [vmem:[#allocation7 + $0xa8] sm:$0xff]  ;;  %2042 = vmatprep.subr.bf16.mxu1 %v2041_v11  ;;  %v2047_v20 = vpack.c.bf16 %v188_v17, %v187_v15  ;;  %v189_v23 = vld [vmem:[#allocation7 + $0x20] sm:$0xff]  ;;  %v2564_v25 = vld [vmem:[#allocation2 + $0x10] sm:$0xff]  ;;  %p2410_p7 = por %p2409_p6, %p2408_p5 }
  0x4f   :  { %2044 = vmatpush3.bf16.msra.mxu1 %v2043_v12  ;;  %v2562_v21 = vld [vmem:[#allocation2 + $0x8] sm:$0xff]  ;;  %v2049_v22 = vpack.c.bf16 %v206_v19, %v205_v18  ;;  %v207_v26 = vld [vmem:[#allocation7 + $0xb0] sm:$0xff]  ;;  %v208_v27 = vld [vmem:[#allocation7 + $0xb8] sm:$0xff] }
  0x50   :  { %2046 = vmatprep.subr.bf16.mxu1 %v2045_v16  ;;  %v190_v24 = vld [vmem:[#allocation7 + $0x28] sm:$0xff]  ;;  %v2570_v29 = vld [vmem:[#allocation2 + $0x18] sm:$0xff]  ;;  %v2053_v30 = vpack.c.bf16 %v208_v27, %v207_v26  ;;  %v191_v31 = vld [vmem:[#allocation7 + $0x30] sm:$0xff]  ;;  %p2411_p8 = pnand %p2410_p7, %p2404_p4 }
  0x51   :  { %2040 = vmatpush3.bf16.msra.mxu0 %v2037_v6  ;;  %v2051_v28 = vpack.c.bf16 %v190_v24, %v189_v23  ;;  %v192_v32 = vld [vmem:[#allocation7 + $0x38] sm:$0xff]  ;;  %v209_v33 = vld [vmem:[#allocation7 + $0xc0] sm:$0xff]  ;;  %v210_v34 = vld [vmem:[#allocation7 + $0xc8] sm:$0xff] }
  0x52   :  { %v2055_v35 = vpack.c.bf16 %v192_v32, %v191_v31  ;;  %v2057_v36 = vpack.c.bf16 %v210_v34, %v209_v33  ;;  %v193_v37 = vld [vmem:[#allocation7 + $0x40] sm:$0xff]  ;;  %v194_v38 = vld [vmem:[#allocation7 + $0x48] sm:$0xff]  ;;  %v211_v39 = vld [vmem:[#allocation7 + $0xd0] sm:$0xff] }
  0x53   :  { %2048 = vmatpush3.bf16.msra.mxu1 %v2047_v20  ;;  %v212_v40 = vld [vmem:[#allocation7 + $0xd8] sm:$0xff]  ;;  %v2059_v41 = vpack.c.bf16 %v194_v38, %v193_v37  ;;  %v195_v43 = vld [vmem:[#allocation7 + $0x50] sm:$0xff]  ;;  %v213_v45 = vld [vmem:[#allocation7 + $0xe0] sm:$0xff] }
  0x54   :  { %1920 = vmatmul.mubr.msk.f32.vlgmr.msra.gmra.mrb[0].mxu0 %vm87_vm0, %v2562_v21  ;;  %2050 = vmatprep.subr.bf16.mxu1 %v2049_v22  ;;  %v2061_v42 = vpack.c.bf16 %v212_v40, %v211_v39  ;;  %v196_v44 = vld [vmem:[#allocation7 + $0x58] sm:$0xff]  ;;  %v214_v46 = vld [vmem:[#allocation7 + $0xe8] sm:$0xff]  ;;  %v197_v49 = vld [vmem:[#allocation7 + $0x60] sm:$0xff] }
  0x55   :  { %1922 = vmatprep.mubr.msk.f32.mxu0 %vm87_vm0, %v2564_v25  ;;  %v2063_v47 = vpack.c.bf16 %v196_v44, %v195_v43  ;;  %v2065_v48 = vpack.c.bf16 %v214_v46, %v213_v45  ;;  %v198_v50 = vld [vmem:[#allocation7 + $0x68] sm:$0xff]  ;;  %v215_v51 = vld [vmem:[#allocation7 + $0xf0] sm:$0xff]  ;;  %v216_v52 = vld [vmem:[#allocation7 + $0xf8] sm:$0xff] }
  0x56   :  { %v2067_v53 = vpack.c.bf16 %v198_v50, %v197_v49  ;;  %v2069_v54 = vpack.c.bf16 %v216_v52, %v215_v51  ;;  %v199_v55 = vld [vmem:[#allocation7 + $0x70] sm:$0xff]  ;;  %v200_v56 = vld [vmem:[#allocation7 + $0x78] sm:$0xff]  ;;  %v1547_v3 = vld [vmem:[%s2755_s3] ss:$0 sm:$0xff] }
  0x57   :  { %2052 = vmatpush3.bf16.msra.mxu1 %v2051_v28  ;;  %v2071_v57 = vpack.c.bf16 %v200_v56, %v199_v55  ;;  %v419_v19 = vld [vmem:[#allocation7 + $0x180] sm:$0xff]  ;;  %v420_v20 = vld [vmem:[#allocation7 + $0x188] sm:$0xff]  ;;  %v422_v31 = vld [vmem:[#allocation7 + $0x198] sm:$0xff] }
  0x58   :  { %1923 = vmatmul.mubr.msk.f32.gmra.mrb[2].mxu0 %vm87_vm0, %v2570_v29  ;;  %2054 = vmatprep.subr.bf16.mxu1 %v2053_v30  ;;  %v2081_v26 = vpack.c.bf16 %v420_v20, %v419_v19  ;;  %v403_v27 = vld [vmem:[#allocation7 + $0x100] sm:$0xff]  ;;  %v404_v28 = vld [vmem:[#allocation7 + $0x108] sm:$0xff]  ;;  %v421_v30 = vld [vmem:[#allocation7 + $0x190] sm:$0xff] }
  0x59   :  { %1933 = vmatprep.mubr.msk.f32.mxu0 %vm87_vm0, %v2556_v5  ;;  %v2083_v32 = vpack.c.bf16 %v404_v28, %v403_v27  ;;  %v2085_v33 = vpack.c.bf16 %v422_v31, %v421_v30  ;;  %v405_v34 = vld [vmem:[#allocation7 + $0x110] sm:$0xff]  ;;  %v424_v37 = vld [vmem:[#allocation7 + $0x1a8] sm:$0xff]  ;;  %v407_v40 = vld [vmem:[#allocation7 + $0x120] sm:$0xff] }
  0x5a   :  { %v426_v43 = vld [vmem:[#allocation7 + $0x1b8] sm:$0xff]  ;;  %v409_v46 = vld [vmem:[#allocation7 + $0x130] sm:$0xff]  ;;  %v428_v49 = vld [vmem:[#allocation7 + $0x1c8] sm:$0xff] }
  0x5b   :  { %2056 = vmatpush3.bf16.msra.mxu1 %v2055_v35  ;;  %v406_v35 = vld [vmem:[#allocation7 + $0x118] sm:$0xff]  ;;  %v411_v52 = vld [vmem:[#allocation7 + $0x140] sm:$0xff]  ;;  %v623_v20 = vld [vmem:[#allocation7 + $0x208] sm:$0xff] }
  0x5c   :  { %2058 = vmatprep.subr.bf16.mxu1 %v2057_v36  ;;  %v423_v36 = vld [vmem:[#allocation7 + $0x1a0] sm:$0xff]  ;;  %v2087_v38 = vpack.c.bf16 %v406_v35, %v405_v34  ;;  %v430_v55 = vld [vmem:[#allocation7 + $0x1d8] sm:$0xff]  ;;  %v624_v30 = vld [vmem:[#allocation7 + $0x210] sm:$0xff] }
  0x5d   :  { %v2089_v39 = vpack.c.bf16 %v424_v37, %v423_v36  ;;  %v625_v31 = vld [vmem:[#allocation7 + $0x218] sm:$0xff]  ;;  %v626_v36 = vld [vmem:[#allocation7 + $0x220] sm:$0xff]  ;;  %v627_v37 = vld [vmem:[#allocation7 + $0x228] sm:$0xff] }
  0x5e   :  { %v2127_v34 = vpack.c.bf16 %v625_v31, %v624_v30 }
  0x5f   :  { %2060 = vmatpush3.bf16.msra.mxu1 %v2059_v41  ;;  %v408_v41 = vld [vmem:[#allocation7 + $0x128] sm:$0xff] }
  0x60   :  { %2062 = vmatprep.subr.bf16.mxu1 %v2061_v42  ;;  %v425_v42 = vld [vmem:[#allocation7 + $0x1b0] sm:$0xff]  ;;  %v2091_v44 = vpack.c.bf16 %v408_v41, %v407_v40  ;;  %v2131_v40 = vpack.c.bf16 %v627_v37, %v626_v36 }
  0x61   :  { %v2093_v45 = vpack.c.bf16 %v426_v43, %v425_v42  ;;  %v628_v42 = vld [vmem:[#allocation7 + $0x230] sm:$0xff]  ;;  %v629_v43 = vld [vmem:[#allocation7 + $0x238] sm:$0xff] }
  0x63   :  { %2064 = vmatpush3.bf16.msra.mxu1 %v2063_v47  ;;  %v410_v47 = vld [vmem:[#allocation7 + $0x138] sm:$0xff] }
  0x64   :  { %2066 = vmatprep.subr.bf16.mxu1 %v2065_v48  ;;  %v427_v48 = vld [vmem:[#allocation7 + $0x1c0] sm:$0xff]  ;;  %v2095_v50 = vpack.c.bf16 %v410_v47, %v409_v46  ;;  %v2135_v46 = vpack.c.bf16 %v629_v43, %v628_v42 }
  0x65   :  { %v2097_v51 = vpack.c.bf16 %v428_v49, %v427_v48  ;;  %v630_v48 = vld [vmem:[#allocation7 + $0x240] sm:$0xff]  ;;  %v631_v49 = vld [vmem:[#allocation7 + $0x248] sm:$0xff] }
  0x66   :  { %v1559_v42 = vld [vmem:[%s2755_s3 + $0x2] ss:$0 sm:$0xff] }
  0x67   :  { %2068 = vmatpush3.bf16.msra.mxu1 %v2067_v53  ;;  %v412_v53 = vld [vmem:[#allocation7 + $0x148] sm:$0xff] }
  0x68   :  { %2070 = vmatprep.subr.bf16.mxu1 %v2069_v54  ;;  %v429_v54 = vld [vmem:[#allocation7 + $0x1d0] sm:$0xff]  ;;  %v2099_v56 = vpack.c.bf16 %v412_v53, %v411_v52  ;;  %v2139_v52 = vpack.c.bf16 %v631_v49, %v630_v48 }
  0x6b   :  { %2072 = vmatpush3.bf16.msra.mxu1 %v2071_v57  ;;  %v2101_v57 = vpack.c.bf16 %v430_v55, %v429_v54  ;;  %v632_v54 = vld [vmem:[#allocation7 + $0x250] sm:$0xff]  ;;  %v633_v55 = vld [vmem:[#allocation7 + $0x258] sm:$0xff] }
 0x127   :  { %v1921_v58 = vpop.f32.mrb[0].mxu0 }
 0x128   :  { %v166_v59 = vpop.f32.mrb[1].mxu0 }
 0x129   :  { %289 = vmatmul.mubr.f32.vlgmr.msra.gmra.mrb[0].mxu1 %v166_v59  ;;  %v414_v59 = vld [vmem:[#allocation7 + $0x158] sm:$0xff] }
 0x12a   :  { %293 = vmatprep.mubr.f32.mxu1 %v2549_v1 }
 0x12b   :  { %v1924_v60 = vpop.f32.mrb[2].mxu0 }
 0x12c   :  { %v176_v61 = vpop.f32.mrb[3].mxu0 }
 0x12d   :  { %294 = vmatmul.mubr.f32.gmra.mrb[2].mxu1 %v1921_v58  ;;  %v413_v58 = vld [vmem:[#allocation7 + $0x150] sm:$0xff] }
 0x12e   :  { %298 = vmatprep.mubr.f32.mxu1 %v2551_v2 }
 0x131   :  { %299 = vmatmul.mubr.f32.gmra.mrb[4].mxu1 %v176_v61  ;;  %v432_v61 = vld [vmem:[#allocation7 + $0x1e8] sm:$0xff] }
 0x132   :  { %303 = vmatprep.mubr.f32.mxu1 %v2554_v4 }
 0x135   :  { %304 = vmatmul.mubr.f32.gmra.mrb[6].mxu1 %v1924_v60  ;;  %v431_v60 = vld [vmem:[#allocation7 + $0x1e0] sm:$0xff] }
 0x136   :  { %1947 = vmatprep.mubr.msk.f32.mxu1 %vm87_vm0, %v2556_v5 }
 0x1fc   :  { %v1619_v62 = vpop.f32.mrb[0].mxu1 }
 0x1fd   :  { %v1620_v63 = vpop.f32.mrb[1].mxu1 }
 0x1fe   :  { %v1621_v0 = vadd.f32 %v1620_v63, %v1619_v62  ;;  %v2103_v62 = vpack.c.bf16 %v414_v59, %v413_v58  ;;  %v2105_v63 = vpack.c.bf16 %v432_v61, %v431_v60  ;;  %v2143_v58 = vpack.c.bf16 %v633_v55, %v632_v54  ;;  %v634_v60 = vld [vmem:[#allocation7 + $0x260] sm:$0xff]  ;;  %v635_v61 = vld [vmem:[#allocation7 + $0x268] sm:$0xff] }
 0x200   :  { %v1622_v1 = vpop.f32.mrb[2].mxu1  ;;  %v291_v7 = vadd.f32 %v1621_v0, %v1547_v3  ;;  %v415_v0 = vld [vmem:[#allocation7 + $0x160] sm:$0xff] }
 0x201   :  { %v1623_v6 = vpop.f32.mrb[3].mxu1 }
 0x202   :  { %v1624_v8 = vadd.f32 %v1623_v6, %v1622_v1  ;;  %v2584_v11 = vmax.f32 %v291_v7, 0.0  ;;  %v433_v1 = vld [vmem:[#allocation7 + $0x1f0] sm:$0xff]  ;;  %v434_v6 = vld [vmem:[#allocation7 + $0x1f8] sm:$0xff] }
 0x204   :  { %v296_v9 = vadd.f32 %v1624_v8, %v1547_v3  ;;  %v1625_v2 = vpop.f32.mrb[4].mxu1  ;;  %v2109_v8 = vpack.c.bf16 %v434_v6, %v433_v1  ;;  %v636_v1 = vld [vmem:[#allocation7 + $0x270] sm:$0xff]  ;;  %v637_v6 = vld [vmem:[#allocation7 + $0x278] sm:$0xff] }
 0x205   :  { %v1626_v10 = vpop.f32.mrb[5].mxu1 }
 0x206   :  { %v2586_v4 = vmax.f32 %v296_v9, 0.0  ;;  %v1627_v12 = vadd.f32 %v1626_v10, %v1625_v2  ;;  %v417_v9 = vld [vmem:[#allocation7 + $0x170] sm:$0xff]  ;;  %v418_v2 = vld [vmem:[#allocation7 + $0x178] sm:$0xff] }
 0x207   :  { %v2111_v10 = vpack.c.bf16 %v418_v2, %v417_v9  ;;  %v1553_v9 = vld [vmem:[%s2755_s3 + $0x1] ss:$0 sm:$0xff] }
 0x208   :  { %v1628_v13 = vpop.f32.mrb[6].mxu1  ;;  %v2073_v14 = vpack.c.bf16 %v2586_v4, %v2584_v11  ;;  %v301_v16 = vadd.f32 %v1627_v12, %v1547_v3 }
 0x209   :  { %v1629_v15 = vpop.f32.mrb[7].mxu1 }
 0x20a   :  { %v1630_v17 = vadd.f32 %v1629_v15, %v1628_v13  ;;  %2074 = vmatprep.subr.bf16.mxu0 %v2073_v14  ;;  %v2590_v22 = vmax.f32 %v301_v16, 0.0  ;;  %v638_v16 = vld [vmem:[#allocation7 + $0x280] sm:$0xff] }
 0x20b   :  { %2076 = vmatpush3.bf16.msra.mxu0 %v2073_v14 }
 0x20c   :  { %v306_v18 = vadd.f32 %v1630_v17, %v1547_v3  ;;  %v416_v3 = vld [vmem:[#allocation7 + $0x168] sm:$0xff] }
 0x20d   :  { %v2107_v7 = vpack.c.bf16 %v416_v3, %v415_v0  ;;  %v639_v17 = vld [vmem:[#allocation7 + $0x288] sm:$0xff]  ;;  %v2147_v0 = vpack.c.bf16 %v635_v61, %v634_v60 }
 0x20e   :  { %v2592_v23 = vmax.f32 %v306_v18, 0.0  ;;  %v622_v18 = vld [vmem:[#allocation7 + $0x200] sm:$0xff]  ;;  %v2121_v19 = vpack.c.bf16 %v639_v17, %v638_v16 }
 0x20f   :  { %v2123_v27 = vpack.c.bf16 %v623_v20, %v622_v18 }
 0x210   :  { %v2077_v24 = vpack.c.bf16 %v2592_v23, %v2590_v22 }
 0x212   :  { %2078 = vmatprep.subr.bf16.mxu0 %v2077_v24 }
 0x213   :  { %2080 = vmatpush3.bf16.msra.mxu0 %v2077_v24  ;;  %v640_v24 = vld [vmem:[#allocation7 + $0x290] sm:$0xff] }
 0x214   :  { %2082 = vmatprep.subr.bf16.mxu0 %v2081_v26  ;;  %v641_v26 = vld [vmem:[#allocation7 + $0x298] sm:$0xff] }
 0x215   :  { %v2125_v28 = vpack.c.bf16 %v641_v26, %v640_v24 }
 0x216   :  { %1934 = vmatmul.mubr.msk.f32.vlgmr.msra.gmra.mrb[4].mxu0 %vm87_vm0, %v2562_v21 }
 0x217   :  { %1936 = vmatprep.mubr.msk.f32.mxu0 %vm87_vm0, %v2564_v25  ;;  %2084 = vmatpush3.bf16.msra.mxu0 %v2083_v32  ;;  %v642_v32 = vld [vmem:[#allocation7 + $0x2a0] sm:$0xff] }
 0x218   :  { %2086 = vmatprep.subr.bf16.mxu0 %v2085_v33  ;;  %v643_v33 = vld [vmem:[#allocation7 + $0x2a8] sm:$0xff] }
 0x219   :  { %v2129_v35 = vpack.c.bf16 %v643_v33, %v642_v32 }
 0x21a   :  { %1937 = vmatmul.mubr.msk.f32.gmra.mrb[6].mxu0 %vm87_vm0, %v2570_v29 }
 0x21b   :  { %507 = vmatprep.mubr.f32.mxu0 %v2584_v11  ;;  %2088 = vmatpush3.bf16.msra.mxu0 %v2087_v38  ;;  %v644_v38 = vld [vmem:[#allocation7 + $0x2b0] sm:$0xff] }
 0x21c   :  { %2090 = vmatprep.subr.bf16.mxu0 %v2089_v39  ;;  %v645_v39 = vld [vmem:[#allocation7 + $0x2b8] sm:$0xff] }
 0x21d   :  { %v2133_v41 = vpack.c.bf16 %v645_v39, %v644_v38 }
 0x21f   :  { %2092 = vmatpush3.bf16.msra.mxu0 %v2091_v44  ;;  %v646_v44 = vld [vmem:[#allocation7 + $0x2c0] sm:$0xff] }
 0x220   :  { %2094 = vmatprep.subr.bf16.mxu0 %v2093_v45  ;;  %v647_v45 = vld [vmem:[#allocation7 + $0x2c8] sm:$0xff] }
 0x221   :  { %v2137_v47 = vpack.c.bf16 %v647_v45, %v646_v44 }
 0x223   :  { %2096 = vmatpush3.bf16.msra.mxu0 %v2095_v50  ;;  %v648_v50 = vld [vmem:[#allocation7 + $0x2d0] sm:$0xff] }
 0x224   :  { %2098 = vmatprep.subr.bf16.mxu0 %v2097_v51  ;;  %v649_v51 = vld [vmem:[#allocation7 + $0x2d8] sm:$0xff] }
 0x225   :  { %v2141_v53 = vpack.c.bf16 %v649_v51, %v648_v50 }
 0x227   :  { %2100 = vmatpush3.bf16.msra.mxu0 %v2099_v56  ;;  %v650_v56 = vld [vmem:[#allocation7 + $0x2e0] sm:$0xff] }
 0x228   :  { %2102 = vmatprep.subr.bf16.mxu0 %v2101_v57  ;;  %v651_v57 = vld [vmem:[#allocation7 + $0x2e8] sm:$0xff] }
 0x229   :  { %v2145_v59 = vpack.c.bf16 %v651_v57, %v650_v56 }
 0x22b   :  { %2104 = vmatpush3.bf16.msra.mxu0 %v2103_v62  ;;  %v652_v62 = vld [vmem:[#allocation7 + $0x2f0] sm:$0xff] }
 0x22c   :  { %2106 = vmatprep.subr.bf16.mxu0 %v2105_v63  ;;  %v653_v63 = vld [vmem:[#allocation7 + $0x2f8] sm:$0xff] }
 0x22d   :  { %v2149_v3 = vpack.c.bf16 %v653_v63, %v652_v62  ;;  %v857_v62 = vld [vmem:[#allocation7 + $0x380] sm:$0xff]  ;;  %v858_v63 = vld [vmem:[#allocation7 + $0x388] sm:$0xff] }
 0x22f   :  { %2108 = vmatpush3.bf16.msra.mxu0 %v2107_v7  ;;  %v2151_v7 = vpack.c.bf16 %v637_v6, %v636_v1  ;;  %v2161_v6 = vpack.c.bf16 %v858_v63, %v857_v62 }
 0x230   :  { %2110 = vmatprep.subr.bf16.mxu0 %v2109_v8 }
 0x233   :  { %2112 = vmatpush3.bf16.msra.mxu0 %v2111_v10 }
 0x234   :  { %2122 = vmatprep.subr.bf16.mxu0 %v2121_v19 }
 0x2e9   :  { %v1935_v12 = vpop.f32.mrb[4].mxu0 }
 0x2ea   :  { %v383_v13 = vpop.f32.mrb[5].mxu0 }
 0x2eb   :  { %508 = vmatmul.mubr.f32.vlgmr.msra.gmra.mrb[8].mxu0 %v383_v13 }
 0x2ec   :  { %512 = vmatprep.mubr.f32.mxu0 %v2586_v4  ;;  %2124 = vmatpush3.bf16.msra.mxu0 %v2123_v27 }
 0x2ed   :  { %v1938_v14 = vpop.f32.mrb[6].mxu0  ;;  %2126 = vmatprep.subr.bf16.mxu0 %v2125_v28 }
 0x2ee   :  { %v393_v15 = vpop.f32.mrb[7].mxu0 }
 0x2ef   :  { %513 = vmatmul.mubr.f32.gmra.mrb[10].mxu0 %v1935_v12 }
 0x2f0   :  { %517 = vmatprep.mubr.f32.mxu0 %v2590_v22  ;;  %2128 = vmatpush3.bf16.msra.mxu0 %v2127_v34 }
 0x2f1   :  { %2130 = vmatprep.subr.bf16.mxu0 %v2129_v35 }
 0x2f3   :  { %518 = vmatmul.mubr.f32.gmra.mrb[12].mxu0 %v393_v15  ;;  %v313_v15 = vmax.f32 %v2584_v11, 0.0 }
 0x2f4   :  { %522 = vmatprep.mubr.f32.mxu0 %v2592_v23  ;;  %2132 = vmatpush3.bf16.msra.mxu0 %v2131_v40 }
 0x2f5   :  { %2134 = vmatprep.subr.bf16.mxu0 %v2133_v41 }
 0x2f7   :  { %523 = vmatmul.mubr.f32.gmra.mrb[14].mxu0 %v1938_v14 }
 0x2f8   :  { %2136 = vmatpush3.bf16.msra.mxu0 %v2135_v46 }
 0x2f9   :  { %2138 = vmatprep.subr.bf16.mxu0 %v2137_v47 }
 0x2fc   :  { %2140 = vmatpush3.bf16.msra.mxu0 %v2139_v52 }
 0x2fd   :  { %2142 = vmatprep.subr.bf16.mxu0 %v2141_v53 }
 0x300   :  { %2144 = vmatpush3.bf16.msra.mxu0 %v2143_v58 }
 0x301   :  { %2146 = vmatprep.subr.bf16.mxu0 %v2145_v59 }
 0x304   :  { %2148 = vmatpush3.bf16.msra.mxu0 %v2147_v0 }
 0x305   :  { %2150 = vmatprep.subr.bf16.mxu0 %v2149_v3 }
 0x308   :  { %2152 = vmatpush3.bf16.msra.mxu0 %v2151_v7  ;;  %v841_v7 = vld [vmem:[#allocation7 + $0x300] sm:$0xff] }
 0x3be   :  { %v1671_v8 = vpop.f32.mrb[8].mxu0 }
 0x3bf   :  { %v1672_v2 = vpop.f32.mrb[9].mxu0 }
 0x3c0   :  { %v1673_v10 = vadd.f32 %v1672_v2, %v1671_v8  ;;  %v842_v8 = vld [vmem:[#allocation7 + $0x308] sm:$0xff]  ;;  %v860_v2 = vld [vmem:[#allocation7 + $0x398] sm:$0xff] }
 0x3c2   :  { %v510_v12 = vadd.f32 %v1673_v10, %v1553_v9  ;;  %v1674_v13 = vpop.f32.mrb[10].mxu0  ;;  %v2163_v10 = vpack.c.bf16 %v842_v8, %v841_v7  ;;  %v1076_v8 = vld [vmem:[#allocation7 + $0x480] sm:$0xff] }
 0x3c3   :  { %v1675_v14 = vpop.f32.mrb[11].mxu0 }
 0x3c4   :  { %v528_v16 = vmax.f32 %v510_v12, 0.0  ;;  %v1676_v17 = vadd.f32 %v1675_v14, %v1674_v13  ;;  %v843_v13 = vld [vmem:[#allocation7 + $0x310] sm:$0xff]  ;;  %v844_v14 = vld [vmem:[#allocation7 + $0x318] sm:$0xff] }
 0x3c6   :  { %v2610_v18 = vmax.f32 %v313_v15, %v528_v16  ;;  %v515_v19 = vadd.f32 %v1676_v17, %v1553_v9  ;;  %v1677_v20 = vpop.f32.mrb[12].mxu0  ;;  %726 = vmatprep.mubr.f32.mxu0 %v528_v16  ;;  %v861_v15 = vld [vmem:[#allocation7 + $0x3a0] sm:$0xff]  ;;  %v2167_v17 = vpack.c.bf16 %v844_v14, %v843_v13  ;;  %v1078_v13 = vld [vmem:[#allocation7 + $0x490] sm:$0xff]  ;;  %v1079_v14 = vld [vmem:[#allocation7 + $0x498] sm:$0xff] }
 0x3c7   :  { %v1678_v24 = vpop.f32.mrb[13].mxu0 }
 0x3c8   :  { %v2612_v26 = vmax.f32 %v515_v19, 0.0  ;;  %v1679_v27 = vadd.f32 %v1678_v24, %v1677_v20  ;;  %v845_v20 = vld [vmem:[#allocation7 + $0x320] sm:$0xff]  ;;  %v846_v24 = vld [vmem:[#allocation7 + $0x328] sm:$0xff] }
 0x3ca   :  { %v1680_v28 = vpop.f32.mrb[14].mxu0  ;;  %v2113_v30 = vpack.c.bf16 %v2612_v26, %v528_v16  ;;  %v520_v32 = vadd.f32 %v1679_v27, %v1553_v9  ;;  %v862_v16 = vld [vmem:[#allocation7 + $0x3a8] sm:$0xff]  ;;  %v863_v27 = vld [vmem:[#allocation7 + $0x3b0] sm:$0xff] }
 0x3cb   :  { %v1681_v31 = vpop.f32.mrb[15].mxu0  ;;  %v2169_v19 = vpack.c.bf16 %v862_v16, %v861_v15  ;;  %v2205_v16 = vpack.c.bf16 %v1079_v14, %v1078_v13 }
 0x3cc   :  { %v1682_v33 = vadd.f32 %v1681_v31, %v1680_v28  ;;  %2114 = vmatprep.subr.bf16.mxu1 %v2113_v30  ;;  %v2615_v34 = vmax.f32 %v520_v32, 0.0  ;;  %v864_v28 = vld [vmem:[#allocation7 + $0x3b8] sm:$0xff]  ;;  %v847_v32 = vld [vmem:[#allocation7 + $0x330] sm:$0xff] }
 0x3cd   :  { %2116 = vmatpush3.bf16.msra.mxu1 %v2113_v30  ;;  %v2171_v30 = vpack.c.bf16 %v846_v24, %v845_v20  ;;  %v2173_v31 = vpack.c.bf16 %v864_v28, %v863_v27  ;;  %v1080_v20 = vld [vmem:[#allocation7 + $0x4a0] sm:$0xff]  ;;  %v1081_v24 = vld [vmem:[#allocation7 + $0x4a8] sm:$0xff] }
 0x3ce   :  { %v525_v11 = vadd.f32 %v1682_v33, %v1553_v9  ;;  %v859_v9 = vld [vmem:[#allocation7 + $0x390] sm:$0xff]  ;;  %v848_v33 = vld [vmem:[#allocation7 + $0x338] sm:$0xff]  ;;  %v2209_v28 = vpack.c.bf16 %v1081_v24, %v1080_v20 }
 0x3cf   :  { %v2165_v12 = vpack.c.bf16 %v860_v2, %v859_v9  ;;  %v1077_v9 = vld [vmem:[#allocation7 + $0x488] sm:$0xff]  ;;  %v1060_v2 = vld [vmem:[#allocation7 + $0x400] sm:$0xff] }
 0x3d0   :  { %v2617_v35 = vmax.f32 %v525_v11, 0.0  ;;  %v865_v11 = vld [vmem:[#allocation7 + $0x3c0] sm:$0xff] }
 0x3d2   :  { %v2117_v36 = vpack.c.bf16 %v2617_v35, %v2615_v34 }
 0x3d4   :  { %2118 = vmatprep.subr.bf16.mxu1 %v2117_v36 }
 0x3d5   :  { %2120 = vmatpush3.bf16.msra.mxu1 %v2117_v36  ;;  %v866_v36 = vld [vmem:[#allocation7 + $0x3c8] sm:$0xff] }
 0x3d8   :  { %1948 = vmatmul.mubr.msk.f32.vlgmr.msra.gmra.mrb[8].mxu1 %vm87_vm0, %v2562_v21 }
 0x3d9   :  { %1950 = vmatprep.mubr.msk.f32.mxu1 %vm87_vm0, %v2564_v25 }
 0x3dc   :  { %1951 = vmatmul.mubr.msk.f32.gmra.mrb[10].mxu1 %vm87_vm0, %v2570_v29 }
 0x3dd   :  { %1961 = vmatprep.mubr.msk.f32.mxu1 %vm87_vm0, %v2556_v5 }
 0x4ab   :  { %v1949_v37 = vpop.f32.mrb[8].mxu1 }
 0x4ac   :  { %v602_v38 = vpop.f32.mrb[9].mxu1 }
 0x4ad   :  { %727 = vmatmul.mubr.f32.vlgmr.msra.gmra.mrb[16].mxu0 %v602_v38  ;;  %v2177_v38 = vpack.c.bf16 %v866_v36, %v865_v11 }
 0x4ae   :  { %731 = vmatprep.mubr.f32.mxu0 %v2612_v26 }
 0x4af   :  { %v1952_v39 = vpop.f32.mrb[10].mxu1 }
 0x4b0   :  { %v612_v40 = vpop.f32.mrb[11].mxu1 }
 0x4b1   :  { %732 = vmatmul.mubr.f32.gmra.mrb[18].mxu0 %v1949_v37  ;;  %v2175_v37 = vpack.c.bf16 %v848_v33, %v847_v32  ;;  %v1082_v32 = vld [vmem:[#allocation7 + $0x4b0] sm:$0xff]  ;;  %v1083_v33 = vld [vmem:[#allocation7 + $0x4b8] sm:$0xff] }
 0x4b2   :  { %736 = vmatprep.mubr.f32.mxu0 %v2615_v34  ;;  %v2213_v36 = vpack.c.bf16 %v1083_v33, %v1082_v32 }
 0x4b5   :  { %737 = vmatmul.mubr.f32.gmra.mrb[20].mxu0 %v612_v40  ;;  %v850_v40 = vld [vmem:[#allocation7 + $0x348] sm:$0xff] }
 0x4b6   :  { %741 = vmatprep.mubr.f32.mxu0 %v2617_v35 }
 0x4b9   :  { %742 = vmatmul.mubr.f32.gmra.mrb[22].mxu0 %v1952_v39  ;;  %v849_v39 = vld [vmem:[#allocation7 + $0x340] sm:$0xff] }
 0x4ba   :  { %1975 = vmatprep.mubr.msk.f32.mxu0 %vm87_vm0, %v2556_v5 }
 0x580   :  { %v1723_v41 = vpop.f32.mrb[16].mxu0 }
 0x581   :  { %v1724_v43 = vpop.f32.mrb[17].mxu0 }
 0x582   :  { %v1725_v44 = vadd.f32 %v1724_v43, %v1723_v41  ;;  %v867_v41 = vld [vmem:[#allocation7 + $0x3d0] sm:$0xff]  ;;  %v2179_v43 = vpack.c.bf16 %v850_v40, %v849_v39  ;;  %v1084_v39 = vld [vmem:[#allocation7 + $0x4c0] sm:$0xff]  ;;  %v1085_v40 = vld [vmem:[#allocation7 + $0x4c8] sm:$0xff] }
 0x584   :  { %v729_v45 = vadd.f32 %v1725_v44, %v1559_v42  ;;  %v1726_v46 = vpop.f32.mrb[18].mxu0 }
 0x585   :  { %v1727_v47 = vpop.f32.mrb[19].mxu0 }
 0x586   :  { %v2637_v48 = vmax.f32 %v729_v45, 0.0  ;;  %v1728_v49 = vadd.f32 %v1727_v47, %v1726_v46  ;;  %v851_v45 = vld [vmem:[#allocation7 + $0x350] sm:$0xff]  ;;  %v852_v46 = vld [vmem:[#allocation7 + $0x358] sm:$0xff]  ;;  %v869_v47 = vld [vmem:[#allocation7 + $0x3e0] sm:$0xff] }
 0x588   :  { %v751_v50 = vmax.f32 %v2610_v18, %v2637_v48  ;;  %v734_v51 = vadd.f32 %v1728_v49, %v1559_v42  ;;  %v1729_v52 = vpop.f32.mrb[20].mxu0  ;;  %v870_v49 = vld [vmem:[#allocation7 + $0x3e8] sm:$0xff] }
 0x589   :  { %v1730_v53 = vpop.f32.mrb[21].mxu0 }
 0x58a   :  { %v2641_v54 = vmax.f32 %v734_v51, 0.0  ;;  %v1731_v55 = vadd.f32 %v1730_v53, %v1729_v52  ;;  %v2183_v51 = vpack.c.bf16 %v852_v46, %v851_v45  ;;  %v2185_v52 = vpack.c.bf16 %v870_v49, %v869_v47  ;;  %v853_v53 = vld [vmem:[#allocation7 + $0x360] sm:$0xff]  ;;  %v1086_v45 = vld [vmem:[#allocation7 + $0x4d0] sm:$0xff]  ;;  %v1087_v46 = vld [vmem:[#allocation7 + $0x4d8] sm:$0xff] }
 0x58b   :  { %v2221_v49 = vpack.c.bf16 %v1087_v46, %v1086_v45 }
 0x58c   :  { %v1732_v56 = vpop.f32.mrb[22].mxu0  ;;  %v2153_v57 = vpack.c.bf16 %v2641_v54, %v2637_v48  ;;  %v739_v59 = vadd.f32 %v1731_v55, %v1559_v42  ;;  %v854_v55 = vld [vmem:[#allocation7 + $0x368] sm:$0xff] }
 0x58d   :  { %v1733_v58 = vpop.f32.mrb[23].mxu0 }
 0x58e   :  { %v1734_v60 = vadd.f32 %v1733_v58, %v1732_v56  ;;  %2154 = vmatprep.subr.bf16.mxu1 %v2153_v57  ;;  %v2645_v0 = vmax.f32 %v739_v59, 0.0  ;;  %v871_v56 = vld [vmem:[#allocation7 + $0x3f0] sm:$0xff]  ;;  %v2187_v58 = vpack.c.bf16 %v854_v55, %v853_v53  ;;  %v1088_v53 = vld [vmem:[#allocation7 + $0x4e0] sm:$0xff]  ;;  %v1089_v55 = vld [vmem:[#allocation7 + $0x4e8] sm:$0xff] }
 0x58f   :  { %2156 = vmatpush3.bf16.msra.mxu1 %v2153_v57  ;;  %v872_v57 = vld [vmem:[#allocation7 + $0x3f8] sm:$0xff] }
 0x590   :  { %v744_v61 = vadd.f32 %v1734_v60, %v1559_v42  ;;  %v868_v42 = vld [vmem:[#allocation7 + $0x3d8] sm:$0xff]  ;;  %v2189_v59 = vpack.c.bf16 %v872_v57, %v871_v56  ;;  %v855_v60 = vld [vmem:[#allocation7 + $0x370] sm:$0xff]  ;;  %v2225_v57 = vpack.c.bf16 %v1089_v55, %v1088_v53 }
 0x591   :  { %v2181_v44 = vpack.c.bf16 %v868_v42, %v867_v41  ;;  %v2217_v42 = vpack.c.bf16 %v1085_v40, %v1084_v39 }
 0x592   :  { %v2647_v3 = vmax.f32 %v744_v61, 0.0  ;;  %v856_v61 = vld [vmem:[#allocation7 + $0x378] sm:$0xff] }
 0x593   :  { %v2191_v62 = vpack.c.bf16 %v856_v61, %v855_v60  ;;  %v1090_v60 = vld [vmem:[#allocation7 + $0x4f0] sm:$0xff]  ;;  %v1091_v61 = vld [vmem:[#allocation7 + $0x4f8] sm:$0xff] }
 0x594   :  { %v2157_v1 = vpack.c.bf16 %v2647_v3, %v2645_v0 }
 0x596   :  { %2158 = vmatprep.subr.bf16.mxu1 %v2157_v1 }
 0x597   :  { %2160 = vmatpush3.bf16.msra.mxu1 %v2157_v1 }
 0x598   :  { %2162 = vmatprep.subr.bf16.mxu1 %v2161_v6 }
 0x59a   :  { %1962 = vmatmul.mubr.msk.f32.vlgmr.msra.gmra.mrb[12].mxu1 %vm87_vm0, %v2562_v21 }
 0x59b   :  { %1964 = vmatprep.mubr.msk.f32.mxu1 %vm87_vm0, %v2564_v25  ;;  %2164 = vmatpush3.bf16.msra.mxu1 %v2163_v10  ;;  %v2201_v10 = vpack.c.bf16 %v1077_v9, %v1076_v8  ;;  %v1565_v9 = vld [vmem:[%s2755_s3 + $0x3] ss:$0 sm:$0xff] }
 0x59c   :  { %2166 = vmatprep.subr.bf16.mxu1 %v2165_v12  ;;  %v1061_v12 = vld [vmem:[#allocation7 + $0x408] sm:$0xff] }
 0x59d   :  { %v2203_v15 = vpack.c.bf16 %v1061_v12, %v1060_v2 }
 0x59e   :  { %1965 = vmatmul.mubr.msk.f32.gmra.mrb[14].mxu1 %vm87_vm0, %v2570_v29 }
 0x59f   :  { %945 = vmatprep.mubr.f32.mxu1 %v2637_v48  ;;  %2168 = vmatpush3.bf16.msra.mxu1 %v2167_v17  ;;  %v1062_v17 = vld [vmem:[#allocation7 + $0x410] sm:$0xff] }
 0x5a0   :  { %2170 = vmatprep.subr.bf16.mxu1 %v2169_v19  ;;  %v1063_v19 = vld [vmem:[#allocation7 + $0x418] sm:$0xff] }
 0x5a1   :  { %v2207_v27 = vpack.c.bf16 %v1063_v19, %v1062_v17 }
 0x5a3   :  { %2172 = vmatpush3.bf16.msra.mxu1 %v2171_v30  ;;  %v1064_v30 = vld [vmem:[#allocation7 + $0x420] sm:$0xff] }
 0x5a4   :  { %2174 = vmatprep.subr.bf16.mxu1 %v2173_v31  ;;  %v1065_v31 = vld [vmem:[#allocation7 + $0x428] sm:$0xff] }
 0x5a5   :  { %v2211_v11 = vpack.c.bf16 %v1065_v31, %v1064_v30 }
 0x5a7   :  { %2176 = vmatpush3.bf16.msra.mxu1 %v2175_v37  ;;  %v1066_v37 = vld [vmem:[#allocation7 + $0x430] sm:$0xff] }
 0x5a8   :  { %2178 = vmatprep.subr.bf16.mxu1 %v2177_v38  ;;  %v1067_v38 = vld [vmem:[#allocation7 + $0x438] sm:$0xff] }
 0x5a9   :  { %v2215_v41 = vpack.c.bf16 %v1067_v38, %v1066_v37 }
 0x5ab   :  { %2180 = vmatpush3.bf16.msra.mxu1 %v2179_v43  ;;  %v1068_v43 = vld [vmem:[#allocation7 + $0x440] sm:$0xff] }
 0x5ac   :  { %2182 = vmatprep.subr.bf16.mxu1 %v2181_v44  ;;  %v1069_v44 = vld [vmem:[#allocation7 + $0x448] sm:$0xff] }
 0x5ad   :  { %v2219_v47 = vpack.c.bf16 %v1069_v44, %v1068_v43 }
 0x5af   :  { %2184 = vmatpush3.bf16.msra.mxu1 %v2183_v51  ;;  %v1070_v51 = vld [vmem:[#allocation7 + $0x450] sm:$0xff] }
 0x5b0   :  { %2186 = vmatprep.subr.bf16.mxu1 %v2185_v52  ;;  %v1071_v52 = vld [vmem:[#allocation7 + $0x458] sm:$0xff] }
 0x5b1   :  { %v2223_v56 = vpack.c.bf16 %v1071_v52, %v1070_v51 }
 0x5b3   :  { %2188 = vmatpush3.bf16.msra.mxu1 %v2187_v58  ;;  %v1072_v58 = vld [vmem:[#allocation7 + $0x460] sm:$0xff] }
 0x5b4   :  { %2190 = vmatprep.subr.bf16.mxu1 %v2189_v59  ;;  %v1073_v59 = vld [vmem:[#allocation7 + $0x468] sm:$0xff] }
 0x5b7   :  { %2192 = vmatpush3.bf16.msra.mxu1 %v2191_v62  ;;  %v2227_v62 = vpack.c.bf16 %v1073_v59, %v1072_v58 }
 0x5b8   :  { %2202 = vmatprep.subr.bf16.mxu1 %v2201_v10 }
 0x66d   :  { %v1963_v63 = vpop.f32.mrb[12].mxu1 }
 0x66e   :  { %v821_v1 = vpop.f32.mrb[13].mxu1 }
 0x66f   :  { %946 = vmatmul.mubr.f32.vlgmr.msra.gmra.mrb[16].mxu1 %v821_v1  ;;  %v1074_v1 = vld [vmem:[#allocation7 + $0x470] sm:$0xff] }
 0x670   :  { %950 = vmatprep.mubr.f32.mxu1 %v2641_v54  ;;  %2204 = vmatpush3.bf16.msra.mxu1 %v2203_v15 }
 0x671   :  { %v1966_v6 = vpop.f32.mrb[14].mxu1  ;;  %2206 = vmatprep.subr.bf16.mxu1 %v2205_v16 }
 0x672   :  { %v831_v7 = vpop.f32.mrb[15].mxu1 }
 0x673   :  { %951 = vmatmul.mubr.f32.gmra.mrb[18].mxu1 %v1963_v63  ;;  %v2229_v63 = vpack.c.bf16 %v1091_v61, %v1090_v60  ;;  %v1295_v61 = vld [vmem:[#allocation7 + $0x580] sm:$0xff] }
 0x674   :  { %955 = vmatprep.mubr.f32.mxu1 %v2645_v0  ;;  %2208 = vmatpush3.bf16.msra.mxu1 %v2207_v27 }
 0x675   :  { %2210 = vmatprep.subr.bf16.mxu1 %v2209_v28 }
 0x677   :  { %956 = vmatmul.mubr.f32.gmra.mrb[20].mxu1 %v831_v7 }
 0x678   :  { %960 = vmatprep.mubr.f32.mxu1 %v2647_v3  ;;  %2212 = vmatpush3.bf16.msra.mxu1 %v2211_v11 }
 0x679   :  { %2214 = vmatprep.subr.bf16.mxu1 %v2213_v36 }
 0x67b   :  { %961 = vmatmul.mubr.f32.gmra.mrb[22].mxu1 %v1966_v6  ;;  %v1075_v6 = vld [vmem:[#allocation7 + $0x478] sm:$0xff] }
 0x67c   :  { %2216 = vmatpush3.bf16.msra.mxu1 %v2215_v41  ;;  %v2231_v7 = vpack.c.bf16 %v1075_v6, %v1074_v1 }
 0x67d   :  { %2218 = vmatprep.subr.bf16.mxu1 %v2217_v42 }
 0x680   :  { %2220 = vmatpush3.bf16.msra.mxu1 %v2219_v47 }
 0x681   :  { %2222 = vmatprep.subr.bf16.mxu1 %v2221_v49 }
 0x684   :  { %2224 = vmatpush3.bf16.msra.mxu1 %v2223_v56 }
 0x685   :  { %2226 = vmatprep.subr.bf16.mxu1 %v2225_v57 }
 0x688   :  { %2228 = vmatpush3.bf16.msra.mxu1 %v2227_v62  ;;  %v1296_v62 = vld [vmem:[#allocation7 + $0x588] sm:$0xff] }
 0x689   :  { %2230 = vmatprep.subr.bf16.mxu1 %v2229_v63 }
 0x68c   :  { %2232 = vmatpush3.bf16.msra.mxu1 %v2231_v7  ;;  %v2241_v7 = vpack.c.bf16 %v1296_v62, %v1295_v61  ;;  %v1310_v61 = vld [vmem:[#allocation7 + $0x5f8] sm:$0xff] }
 0x742   :  { %v1775_v8 = vpop.f32.mrb[16].mxu1 }
 0x743   :  { %v1776_v2 = vpop.f32.mrb[17].mxu1 }
 0x744   :  { %v1777_v10 = vadd.f32 %v1776_v2, %v1775_v8  ;;  %v1279_v8 = vld [vmem:[#allocation7 + $0x500] sm:$0xff]  ;;  %v1297_v2 = vld [vmem:[#allocation7 + $0x590] sm:$0xff] }
 0x746   :  { %v948_v12 = vadd.f32 %v1777_v10, %v1565_v9  ;;  %v1778_v13 = vpop.f32.mrb[18].mxu1  ;;  %v1298_v10 = vld [vmem:[#allocation7 + $0x598] sm:$0xff] }
 0x747   :  { %v1779_v14 = vpop.f32.mrb[19].mxu1 }
 0x748   :  { %v966_v15 = vmax.f32 %v948_v12, 0.0  ;;  %v1780_v16 = vadd.f32 %v1779_v14, %v1778_v13  ;;  %v2245_v13 = vpack.c.bf16 %v1298_v10, %v1297_v2  ;;  %v1281_v14 = vld [vmem:[#allocation7 + $0x510] sm:$0xff]  ;;  %v1412_v2 = vld [vmem:[#allocation8] sm:$0xff]  ;;  %v1413_v10 = vld [vmem:[#allocation8 + $0x8] sm:$0xff] }
 0x74a   :  { %v2667_v17 = vmax.f32 %v751_v50, %v966_v15  ;;  %v953_v19 = vadd.f32 %v1780_v16, %v1565_v9  ;;  %v1781_v20 = vpop.f32.mrb[20].mxu1  ;;  %1164 = vmatprep.mubr.f32.mxu1 %v966_v15  ;;  %v1299_v16 = vld [vmem:[#allocation7 + $0x5a0] sm:$0xff] }
 0x74b   :  { %v1782_v24 = vpop.f32.mrb[21].mxu1 }
 0x74c   :  { %v2669_v27 = vmax.f32 %v953_v19, 0.0  ;;  %v1783_v28 = vadd.f32 %v1782_v24, %v1781_v20  ;;  %v1300_v19 = vld [vmem:[#allocation7 + $0x5a8] sm:$0xff]  ;;  %v2313_v24 = vld [vmem:[#allocation2 + $0x10] sm:$0xff] }
 0x74d   :  { %v2312_v20 = vld [vmem:[#allocation2 + $0x8] sm:$0xff] }
 0x74e   :  { %v1784_v30 = vpop.f32.mrb[22].mxu1  ;;  %v2193_v31 = vpack.c.bf16 %v2669_v27, %v966_v15  ;;  %v958_v33 = vadd.f32 %v1783_v28, %v1565_v9  ;;  %v1282_v15 = vld [vmem:[#allocation7 + $0x518] sm:$0xff] }
 0x74f   :  { %v1785_v32 = vpop.f32.mrb[23].mxu1  ;;  %v2247_v28 = vpack.c.bf16 %v1282_v15, %v1281_v14  ;;  %v1415_v14 = vld [vmem:[#allocation8 + $0x18] sm:$0xff] }
 0x750   :  { %v1786_v11 = vadd.f32 %v1785_v32, %v1784_v30  ;;  %2194 = vmatprep.subr.bf16.mxu0 %v2193_v31  ;;  %v2672_v37 = vmax.f32 %v958_v33, 0.0  ;;  %v2249_v30 = vpack.c.bf16 %v1300_v19, %v1299_v16  ;;  %v1284_v32 = vld [vmem:[#allocation7 + $0x528] sm:$0xff]  ;;  %v1301_v33 = vld [vmem:[#allocation7 + $0x5b0] sm:$0xff]  ;;  %v1416_v16 = vld [vmem:[#allocation8 + $0x20] sm:$0xff] }
 0x751   :  { %2196 = vmatpush3.bf16.msra.mxu0 %v2193_v31  ;;  %v1283_v31 = vld [vmem:[#allocation7 + $0x520] sm:$0xff]  ;;  %v1417_v19 = vld [vmem:[#allocation8 + $0x28] sm:$0xff] }
 0x752   :  { %v963_v36 = vadd.f32 %v1786_v11, %v1565_v9  ;;  %v1280_v9 = vld [vmem:[#allocation7 + $0x508] sm:$0xff]  ;;  %v1302_v11 = vld [vmem:[#allocation7 + $0x5b8] sm:$0xff] }
 0x753   :  { %v2243_v12 = vpack.c.bf16 %v1280_v9, %v1279_v8  ;;  %v1294_v8 = vld [vmem:[#allocation7 + $0x578] sm:$0xff] }
 0x754   :  { %v2674_v18 = vmax.f32 %v963_v36, 0.0  ;;  %v2314_v36 = vld [vmem:[#allocation2 + $0x18] sm:$0xff] }
 0x756   :  { %v2197_v48 = vpack.c.bf16 %v2674_v18, %v2672_v37 }
 0x758   :  { %2198 = vmatprep.subr.bf16.mxu0 %v2197_v48 }
 0x759   :  { %2200 = vmatpush3.bf16.msra.mxu0 %v2197_v48  ;;  %v2251_v48 = vpack.c.bf16 %v1284_v32, %v1283_v31  ;;  %v1420_v31 = vld [vmem:[#allocation8 + $0x40] sm:$0xff]  ;;  %v1421_v32 = vld [vmem:[#allocation8 + $0x48] sm:$0xff] }
 0x75c   :  { %1976 = vmatmul.mubr.msk.f32.vlgmr.msra.gmra.mrb[24].mxu0 %vm87_vm0, %v2562_v21 }
 0x75d   :  { %1978 = vmatprep.mubr.msk.f32.mxu0 %vm87_vm0, %v2564_v25  ;;  %v1571_v25 = vld [vmem:[%s2755_s3 + $0x4] ss:$0 sm:$0xff] }
 0x760   :  { %1979 = vmatmul.mubr.msk.f32.gmra.mrb[26].mxu0 %vm87_vm0, %v2570_v29 }
 0x761   :  { %1989 = vmatprep.mubr.msk.f32.mxu0 %vm87_vm0, %v2556_v5 }
 0x82f   :  { %v1977_v50 = vpop.f32.mrb[24].mxu0 }
 0x830   :  { %v1040_v38 = vpop.f32.mrb[25].mxu0 }
 0x831   :  { %1165 = vmatmul.mubr.f32.vlgmr.msra.gmra.mrb[24].mxu1 %v1040_v38  ;;  %v1285_v38 = vld [vmem:[#allocation7 + $0x530] sm:$0xff] }
 0x832   :  { %1169 = vmatprep.mubr.f32.mxu1 %v2669_v27 }
 0x833   :  { %v1980_v39 = vpop.f32.mrb[26].mxu0 }
 0x834   :  { %v1050_v40 = vpop.f32.mrb[27].mxu0 }
 0x835   :  { %1170 = vmatmul.mubr.f32.gmra.mrb[26].mxu1 %v1977_v50  ;;  %v2253_v50 = vpack.c.bf16 %v1302_v11, %v1301_v33  ;;  %v2289_v33 = vpack.c.bf16 %v1421_v32, %v1420_v31 }
 0x836   :  { %1174 = vmatprep.mubr.f32.mxu1 %v2672_v37 }
 0x839   :  { %1175 = vmatmul.mubr.f32.gmra.mrb[28].mxu1 %v1050_v40  ;;  %v1303_v40 = vld [vmem:[#allocation7 + $0x5c0] sm:$0xff] }
 0x83a   :  { %1179 = vmatprep.mubr.f32.mxu1 %v2674_v18 }
 0x83d   :  { %1180 = vmatmul.mubr.f32.gmra.mrb[30].mxu1 %v1980_v39  ;;  %v1286_v39 = vld [vmem:[#allocation7 + $0x538] sm:$0xff] }
 0x904   :  { %v1827_v21 = vpop.f32.mrb[24].mxu1 }
 0x905   :  { %v1828_v5 = vpop.f32.mrb[25].mxu1 }
 0x906   :  { %v1829_v29 = vadd.f32 %v1828_v5, %v1827_v21  ;;  %v1304_v21 = vld [vmem:[#allocation7 + $0x5c8] sm:$0xff] }
 0x907   :  { %v2257_v5 = vpack.c.bf16 %v1304_v21, %v1303_v40  ;;  %v1424_v21 = vld [vmem:[#allocation8 + $0x60] sm:$0xff] }
 0x908   :  { %v1167_v41 = vadd.f32 %v1829_v29, %v1571_v25  ;;  %v1830_v42 = vpop.f32.mrb[26].mxu1  ;;  %v1287_v29 = vld [vmem:[#allocation7 + $0x540] sm:$0xff] }
 0x909   :  { %v1831_v43 = vpop.f32.mrb[27].mxu1 }
 0x90a   :  { %v2692_v44 = vmax.f32 %v1167_v41, 0.0  ;;  %v1832_v45 = vadd.f32 %v1831_v43, %v1830_v42  ;;  %v1288_v41 = vld [vmem:[#allocation7 + $0x548] sm:$0xff]  ;;  %v1305_v42 = vld [vmem:[#allocation7 + $0x5d0] sm:$0xff]  ;;  %v1306_v43 = vld [vmem:[#allocation7 + $0x5d8] sm:$0xff] }
 0x90c   :  { %v1172_v46 = vadd.f32 %v1832_v45, %v1571_v25  ;;  %v1833_v47 = vpop.f32.mrb[28].mxu1  ;;  %v1189_v49 = vmax.f32 %v2667_v17, %v2692_v44  ;;  %v2259_v45 = vpack.c.bf16 %v1288_v41, %v1287_v29  ;;  %v1426_v29 = vld [vmem:[#allocation8 + $0x70] sm:$0xff]  ;;  %v1427_v41 = vld [vmem:[#allocation8 + $0x78] sm:$0xff] }
 0x90d   :  { %v1834_v51 = vpop.f32.mrb[29].mxu1 }
 0x90e   :  { %v2696_v52 = vmax.f32 %v1172_v46, 0.0  ;;  %v1835_v53 = vadd.f32 %v1834_v51, %v1833_v47  ;;  %v2261_v46 = vpack.c.bf16 %v1306_v43, %v1305_v42  ;;  %v1289_v47 = vld [vmem:[#allocation7 + $0x550] sm:$0xff]  ;;  %v1290_v51 = vld [vmem:[#allocation7 + $0x558] sm:$0xff]  ;;  %v2301_v42 = vpack.c.bf16 %v1427_v41, %v1426_v29 }
 0x910   :  { %v1836_v55 = vpop.f32.mrb[30].mxu1  ;;  %v2233_v56 = vpack.c.bf16 %v2696_v52, %v2692_v44  ;;  %v1177_v58 = vadd.f32 %v1835_v53, %v1571_v25  ;;  %v1307_v53 = vld [vmem:[#allocation7 + $0x5e0] sm:$0xff] }
 0x911   :  { %v1837_v57 = vpop.f32.mrb[31].mxu1 }
 0x912   :  { %v1838_v59 = vadd.f32 %v1837_v57, %v1836_v55  ;;  %2234 = vmatprep.subr.bf16.mxu0 %v2233_v56  ;;  %v2700_v63 = vmax.f32 %v1177_v58, 0.0  ;;  %v1308_v55 = vld [vmem:[#allocation7 + $0x5e8] sm:$0xff]  ;;  %v1291_v58 = vld [vmem:[#allocation7 + $0x560] sm:$0xff] }
 0x913   :  { %2236 = vmatpush3.bf16.msra.mxu0 %v2233_v56  ;;  %v2263_v56 = vpack.c.bf16 %v1290_v51, %v1289_v47  ;;  %v2265_v57 = vpack.c.bf16 %v1308_v55, %v1307_v53  ;;  %v314_v47 = vmax.f32 %v2586_v4, 0.0 }
 0x914   :  { %v1182_v60 = vadd.f32 %v1838_v59, %v1571_v25  ;;  %v2255_v25 = vpack.c.bf16 %v1286_v39, %v1285_v38  ;;  %v1292_v59 = vld [vmem:[#allocation7 + $0x568] sm:$0xff]  ;;  %v1422_v38 = vld [vmem:[#allocation8 + $0x50] sm:$0xff]  ;;  %v1423_v39 = vld [vmem:[#allocation8 + $0x58] sm:$0xff] }
 0x915   :  { %v2267_v62 = vpack.c.bf16 %v1292_v59, %v1291_v58  ;;  %v2293_v40 = vpack.c.bf16 %v1423_v39, %v1422_v38  ;;  %v533_v53 = vmax.f32 %v314_v47, %v2612_v26  ;;  %v315_v58 = vmax.f32 %v2590_v22, 0.0 }
 0x916   :  { %v2702_v1 = vmax.f32 %v1182_v60, 0.0  ;;  %v1309_v60 = vld [vmem:[#allocation7 + $0x5f0] sm:$0xff]  ;;  %v316_v26 = vmax.f32 %v2592_v23, 0.0 }
 0x917   :  { %v752_v59 = vmax.f32 %v533_v53, %v2641_v54 }
 0x918   :  { %v2237_v6 = vpack.c.bf16 %v2702_v1, %v2700_v63 }
 0x91a   :  { %2238 = vmatprep.subr.bf16.mxu0 %v2237_v6 }
 0x91b   :  { %2240 = vmatpush3.bf16.msra.mxu0 %v2237_v6  ;;  %v2269_v6 = vpack.c.bf16 %v1310_v61, %v1309_v60 }
 0x91c   :  { %2242 = vmatprep.subr.bf16.mxu0 %v2241_v7  ;;  %v1293_v7 = vld [vmem:[#allocation7 + $0x570] sm:$0xff] }
 0x91d   :  { %v2271_v9 = vpack.c.bf16 %v1294_v8, %v1293_v7 }
 0x91e   :  { %1990 = vmatmul.mubr.msk.f32.vlgmr.msra.gmra.mrb[28].mxu0 %vm87_vm0, %v2312_v20  ;;  %v2281_v20 = vpack.c.bf16 %v1417_v19, %v1416_v16 }
 0x91f   :  { %1992 = vmatprep.mubr.msk.f32.mxu0 %vm87_vm0, %v2313_v24  ;;  %2244 = vmatpush3.bf16.msra.mxu0 %v2243_v12  ;;  %v1414_v12 = vld [vmem:[#allocation8 + $0x10] sm:$0xff] }
 0x920   :  { %2246 = vmatprep.subr.bf16.mxu0 %v2245_v13  ;;  %v2273_v13 = vpack.c.bf16 %v1413_v10, %v1412_v2  ;;  %v2277_v15 = vpack.c.bf16 %v1415_v14, %v1414_v12  ;;  %v1418_v24 = vld [vmem:[#allocation8 + $0x30] sm:$0xff] }
 0x922   :  { %1993 = vmatmul.mubr.msk.f32.gmra.mrb[30].mxu0 %vm87_vm0, %v2314_v36  ;;  %2274 = vmatprep.subr.bf16.mxu1 %v2273_v13 }
 0x923   :  { %1383 = vmatprep.mubr.f32.mxu0 %v2692_v44  ;;  %2248 = vmatpush3.bf16.msra.mxu0 %v2247_v28  ;;  %v1419_v28 = vld [vmem:[#allocation8 + $0x38] sm:$0xff] }
 0x924   :  { %2250 = vmatprep.subr.bf16.mxu0 %v2249_v30  ;;  %2276 = vmatpush3.bf16.msra.mxu1 %v2273_v13  ;;  %v2285_v30 = vpack.c.bf16 %v1419_v28, %v1418_v24 }
 0x925   :  { %2278 = vmatprep.subr.bf16.mxu1 %v2277_v15 }
 0x927   :  { %2252 = vmatpush3.bf16.msra.mxu0 %v2251_v48 }
 0x928   :  { %2254 = vmatprep.subr.bf16.mxu0 %v2253_v50  ;;  %2280 = vmatpush3.bf16.msra.mxu1 %v2277_v15 }
 0x929   :  { %2282 = vmatprep.subr.bf16.mxu1 %v2281_v20 }
 0x92b   :  { %2256 = vmatpush3.bf16.msra.mxu0 %v2255_v25  ;;  %v1425_v25 = vld [vmem:[#allocation8 + $0x68] sm:$0xff] }
 0x92c   :  { %2258 = vmatprep.subr.bf16.mxu0 %v2257_v5  ;;  %2284 = vmatpush3.bf16.msra.mxu1 %v2281_v20  ;;  %v2297_v5 = vpack.c.bf16 %v1425_v25, %v1424_v21  ;;  %v1578_v20 = vld [vmem:[%s2757_s5] ss:$0 sm:$0xff] }
 0x92d   :  { %2286 = vmatprep.subr.bf16.mxu1 %v2285_v30 }
 0x92f   :  { %2260 = vmatpush3.bf16.msra.mxu0 %v2259_v45  ;;  %v1577_v45 = vld [vmem:[%s2755_s3 + $0x5] ss:$0 sm:$0xff] }
 0x930   :  { %2262 = vmatprep.subr.bf16.mxu0 %v2261_v46  ;;  %2288 = vmatpush3.bf16.msra.mxu1 %v2285_v30 }
 0x931   :  { %2290 = vmatprep.subr.bf16.mxu1 %v2289_v33 }
 0x933   :  { %2264 = vmatpush3.bf16.msra.mxu0 %v2263_v56 }
 0x934   :  { %2266 = vmatprep.subr.bf16.mxu0 %v2265_v57  ;;  %2292 = vmatpush3.bf16.msra.mxu1 %v2289_v33 }
 0x935   :  { %2294 = vmatprep.subr.bf16.mxu1 %v2293_v40 }
 0x937   :  { %2268 = vmatpush3.bf16.msra.mxu0 %v2267_v62  ;;  %v534_v62 = vmax.f32 %v315_v58, %v2615_v34  ;;  %v535_v34 = vmax.f32 %v316_v26, %v2617_v35 }
 0x938   :  { %2270 = vmatprep.subr.bf16.mxu0 %v2269_v6  ;;  %2296 = vmatpush3.bf16.msra.mxu1 %v2293_v40  ;;  %v971_v6 = vmax.f32 %v752_v59, %v2669_v27 }
 0x939   :  { %2298 = vmatprep.subr.bf16.mxu1 %v2297_v5  ;;  %v753_v2 = vmax.f32 %v534_v62, %v2645_v0  ;;  %v754_v17 = vmax.f32 %v535_v34, %v2647_v3 }
 0x93a   :  { %v1190_v22 = vmax.f32 %v971_v6, %v2696_v52 }
 0x93b   :  { %2272 = vmatpush3.bf16.msra.mxu0 %v2271_v9  ;;  %v972_v27 = vmax.f32 %v753_v2, %v2672_v37 }
 0x93c   :  { %2300 = vmatpush3.bf16.msra.mxu1 %v2297_v5 }
 0x93d   :  { %2302 = vmatprep.subr.bf16.mxu1 %v2301_v42  ;;  %v1191_v0 = vmax.f32 %v972_v27, %v2700_v63 }
 0x940   :  { %2304 = vmatpush3.bf16.msra.mxu1 %v2301_v42 }
 0x9f1   :  { %v1991_v11 = vpop.f32.mrb[28].mxu0 }
 0x9f2   :  { %v1259_v36 = vpop.f32.mrb[29].mxu0 }
 0x9f3   :  { %1384 = vmatmul.mubr.f32.vlgmr.msra.gmra.mrb[32].mxu0 %v1259_v36 }
 0x9f4   :  { %1388 = vmatprep.mubr.f32.mxu0 %v2696_v52 }
 0x9f5   :  { %v1994_v48 = vpop.f32.mrb[30].mxu0 }
 0x9f6   :  { %v1269_v50 = vpop.f32.mrb[31].mxu0 }
 0x9f7   :  { %1389 = vmatmul.mubr.f32.gmra.mrb[34].mxu0 %v1991_v11 }
 0x9f8   :  { %1393 = vmatprep.mubr.f32.mxu0 %v2700_v63 }
 0x9fb   :  { %1394 = vmatmul.mubr.f32.gmra.mrb[36].mxu0 %v1269_v50 }
 0x9fc   :  { %1398 = vmatprep.mubr.f32.mxu0 %v2702_v1 }
 0x9ff   :  { %1399 = vmatmul.mubr.f32.gmra.mrb[38].mxu0 %v1994_v48 }
 0xac6   :  { %v1879_v43 = vpop.f32.mrb[32].mxu0 }
 0xac7   :  { %v1880_v46 = vpop.f32.mrb[33].mxu0 }
 0xac8   :  { %v1881_v51 = vadd.f32 %v1880_v46, %v1879_v43 }
 0xaca   :  { %v1386_v55 = vadd.f32 %v1881_v51, %v1577_v45  ;;  %v1882_v56 = vpop.f32.mrb[34].mxu0 }
 0xacb   :  { %v1883_v57 = vpop.f32.mrb[35].mxu0 }
 0xacc   :  { %v1404_v60 = vmax.f32 %v1386_v55, 0.0  ;;  %v1884_v61 = vadd.f32 %v1883_v57, %v1882_v56 }
 0xace   :  { %v1391_v7 = vadd.f32 %v1884_v61, %v1577_v45  ;;  %v1885_v8 = vpop.f32.mrb[36].mxu0  ;;  %v1408_v4 = vmax.f32 %v1189_v49, %v1404_v60  ;;  %v973_v49 = vmax.f32 %v754_v17, %v2674_v18 }
 0xacf   :  { %v1886_v9 = vpop.f32.mrb[37].mxu0 }
 0xad0   :  { %v1405_v54 = vmax.f32 %v1391_v7, 0.0  ;;  %v1887_v10 = vadd.f32 %v1886_v9, %v1885_v8  ;;  %2027 = vmatprep.mubr.f32.mxu1 %v1408_v4  ;;  %v1192_v35 = vmax.f32 %v973_v49, %v2702_v1 }
 0xad2   :  { %v1409_v12 = vmax.f32 %v1190_v22, %v1405_v54  ;;  %v1396_v13 = vadd.f32 %v1887_v10, %v1577_v45  ;;  %v1888_v14 = vpop.f32.mrb[38].mxu0 }
 0xad3   :  { %v1889_v15 = vpop.f32.mrb[39].mxu0 }
 0xad4   :  { %v1406_v44 = vmax.f32 %v1396_v13, 0.0  ;;  %v1890_v23 = vadd.f32 %v1889_v15, %v1888_v14  ;;  %2028 = vmatmul.mubr.f32.vlgmr.msra.gmra.mrb[32].mxu1 %v1409_v12 }
 0xad6   :  { %v1401_v52 = vadd.f32 %v1890_v23, %v1577_v45  ;;  %v1410_v16 = vmax.f32 %v1191_v0, %v1406_v44 }
 0xad8   :  { %v1407_v19 = vmax.f32 %v1401_v52, 0.0  ;;  %2030 = vmatprep.mubr.f32.mxu1 %v1410_v16 }
 0xada   :  { %v1411_v37 = vmax.f32 %v1192_v35, %v1407_v19 }
 0xadc   :  { %2031 = vmatmul.mubr.f32.gmra.mrb[34].mxu1 %v1411_v37 }
 0xba7   :  { %v2029_v3 = vpop.f32.mrb[32].mxu1 }
 0xba8   :  { %v1507_v24 = vadd.f32 %v2029_v3, %v1578_v20  ;;  %v1501_v28 = vpop.f32.mrb[33].mxu1 }
 0xba9   :  { %v1502_v30 = vadd.f32 %v1578_v20, %v1501_v28 }
 0xbaa   :  { %1521 = vst [vmem:[#allocation10 + $0x8] sm:$0xff] %v1507_v24 }
 0xbab   :  { %1520 = vst [vmem:[#allocation10] sm:$0xff] %v1502_v30 }
 0xbaf   :  { %v2032_v18 = vpop.f32.mrb[34].mxu1 }
 0xbb0   :  { %v1517_v63 = vadd.f32 %v2032_v18, %v1578_v20  ;;  %v1511_v31 = vpop.f32.mrb[35].mxu1 }
 0xbb1   :  { %v1512_v32 = vadd.f32 %v1578_v20, %v1511_v31 }
 0xbb2   :  { %1523 = vst [vmem:[#allocation10 + $0x18] sm:$0xff] %v1517_v63 }
 0xbb3   :  { %1522 = vst [vmem:[#allocation10 + $0x10] sm:$0xff] %v1512_v32 }
 0xbb4   :  { %2414 = shalt.err (!%p2411_p8)
}
 0xbb5   :  { %s2415_s14 = scalar_lea.hbm %s2758_s6, 512 }
 0xbb6   :  { %p2416_p9 = scmp.ne.s32.totalorder %s2758_s6, %s2415_s14  ;;  %p2419_p10 = scmp.lt.u32.totalorder %s2415_s14, %s2758_s6 }
 0xbb8   :  { %p2421_p11 = pnand %p2419_p10, %p2416_p9 }
 0xbba   :  { %2424 = shalt.err (!%p2421_p11)
}
 0xbbb   :  { %1535 = dma.vmem_to_hbm [thread:$0]  %s1530_s24, 512, %s2758_s6, [#allocation4], %s2435_s9, %s2435_s9, %s2436_s10  }
 0xbbc   :  { %2431 = dma.done.wait [#allocation4], 512  }
 0xbbd   :  { %2432 = vsyncadd [#allocation4], 4294966784 }
 0xbbe   :  { %1539 = vsyncpa [#allocation3], 1 }
 0xbbf   :  { %1540 = vsyncpa [#allocation6], 1 }
 0xbc0   :  { %1541 = vsyncpa [#allocation9], 1 }
 0xbc1   :  { %1542 = vsyncpa [#allocation4], 1 }

</bundles_post_ra>
